<compile_context>
chip_gen: v6e
topology: v6e:2x2x1
jax: 0.10.0
libtpu: 0.0.40
codegen_flags: <defaults>
</compile_context>

<pallas_src>
import math
import functools

import jax
import jax.numpy as jnp
from jax.experimental import pallas as pl
from jax.experimental.pallas import tpu as pltpu


# ----------------------------------------------------------------------------
# Fused per-layer Pallas kernel
# ----------------------------------------------------------------------------
def make_layer_kernel(heads, dim_head, n, dim, inner_ff):
    scale = dim_head ** (-0.5)
    bias_scale = dim_head ** 0.5
    neg_max = -float(jnp.finfo(jnp.float32).max)
    inv_sqrt2 = 1.0 / math.sqrt(2.0)

    def layernorm(z, g, b):
        mean = jnp.mean(z, axis=-1, keepdims=True)
        var = jnp.mean((z - mean) ** 2, axis=-1, keepdims=True)
        return (z - mean) * jax.lax.rsqrt(var + 1e-5) * g + b

    def kernel(x_ref, ag_ref, ab_ref, wq_ref, wkv_ref, wo_ref, bo_ref, bias_ref,
               fg_ref, fb_ref, w1v_ref, b1v_ref, w1g_ref, b1g_ref, w2_ref, b2_ref,
               o_ref):
        x = x_ref[0]                                           # (n, dim) f32, kept for residuals

        # ---------------- Residual(PreNorm(Attention)) ----------------
        xn = layernorm(x, ag_ref[0], ab_ref[0])                # f32 elementwise math
        xn_bf = xn.astype(jnp.bfloat16)

        # shared K / V (multi-query): single fused projection, no bias
        kv = jnp.dot(xn_bf, wkv_ref[...], preferred_element_type=jnp.float32)   # (n, 2*dh) f32
        k = kv[:, :dim_head].astype(jnp.bfloat16)
        v = kv[:, dim_head:].astype(jnp.bfloat16)

        # fused Q projection for all heads at once (one batched MXU contraction)
        xb = jnp.broadcast_to(xn_bf, (heads, n, dim))
        q = jnp.einsum('hnd,hde->hne', xb, wq_ref[...],
                       preferred_element_type=jnp.float32) * scale              # (h, n, dh) f32
        qb = q.astype(jnp.bfloat16)

        # broadcast shared K/V across heads so score/context use the plain batched
        # ('bqd,bkd->bqk' / 'bqk,bkd->bqd') MXU patterns.
        kb = jnp.broadcast_to(k, (heads, n, dim_head))
        vb = jnp.broadcast_to(v, (heads, n, dim_head))

        sim = jnp.einsum('hqe,hke->hqk', qb, kb,
                         preferred_element_type=jnp.float32)                    # (h, n, n) f32
        sim = sim + bias_ref[...] * bias_scale                                  # T5 rel-pos bias

        rows = jax.lax.broadcasted_iota(jnp.int32, (n, n), 0)
        cols = jax.lax.broadcasted_iota(jnp.int32, (n, n), 1)
        causal = jnp.broadcast_to((cols > rows)[None], (heads, n, n))           # triu(diag=1)
        sim = jnp.where(causal, neg_max, sim)

        sim = sim - jnp.max(sim, axis=-1, keepdims=True)                        # f32 softmax
        p = jnp.exp(sim)
        p = p * pl.reciprocal(jnp.sum(p, axis=-1, keepdims=True), approx=True)

        ctx = jnp.einsum('hqk,hke->hqe', p.astype(jnp.bfloat16), vb,
                         preferred_element_type=jnp.float32)                    # (h, n, dh)

        # fused output projection: one batched matmul with the full Wo, then head-sum
        proj = jnp.einsum('hqe,hed->hqd', ctx.astype(jnp.bfloat16), wo_ref[...],
                          preferred_element_type=jnp.float32)                   # (h, n, dim)
        x1 = jnp.sum(proj, axis=0) + bo_ref[0] + x             # to_out bias + residual #1

        # ------------- Residual(PreNorm(FeedForward)) : GEGLU -------------
        yn = layernorm(x1, fg_ref[0], fb_ref[0])
        yb = yn.astype(jnp.bfloat16)
        val = jnp.dot(yb, w1v_ref[...], preferred_element_type=jnp.float32) + b1v_ref[0]
        gate = jnp.dot(yb, w1g_ref[...], preferred_element_type=jnp.float32) + b1g_ref[0]
        gelu = 0.5 * gate * (1.0 + jax.lax.erf(gate * inv_sqrt2))   # exact GELU (F.gelu default)
        act = (val * gelu).astype(jnp.bfloat16)
        ff = jnp.dot(act, w2_ref[...], preferred_element_type=jnp.float32) + b2_ref[0]
        o_ref[0] = ff + x1                                     # residual #2

    return kernel


# ----------------------------------------------------------------------------
# Wrapper
# ----------------------------------------------------------------------------
def lamda_layer(x, attn_p, ff_p, bias, *, heads, dim_head):
    B, n, dim = x.shape
    inner_ff = dim * 4

    # Repack weights into MXU-friendly per-head layouts + bf16 matmul operands
    # (LayerNorm params, additive biases and the rel-pos bias stay f32).
    wq3 = attn_p["wq"].reshape(dim, heads, dim_head).transpose(1, 0, 2).astype(jnp.bfloat16)
    wkv = attn_p["wkv"].astype(jnp.bfloat16)
    wo3 = attn_p["wo"].reshape(heads, dim_head, dim).astype(jnp.bfloat16)
    w1v = ff_p["w1"][:, :inner_ff].astype(jnp.bfloat16)
    w1g = ff_p["w1"][:, inner_ff:].astype(jnp.bfloat16)
    b1v = ff_p["b1"][:, :inner_ff]
    b1g = ff_p["b1"][:, inner_ff:]
    w2 = ff_p["w2"].astype(jnp.bfloat16)

    kernel = make_layer_kernel(heads, dim_head, n, dim, inner_ff)
    c2 = lambda b: (0, 0)
    c3 = lambda b: (0, 0, 0)
    return pl.pallas_call(
        kernel,
        out_shape=jax.ShapeDtypeStruct((B, n, dim), jnp.float32),
        grid=(B,),
        in_specs=[
            pl.BlockSpec((1, n, dim), lambda b: (b, 0, 0)),        # x (residual input)
            pl.BlockSpec((1, dim), c2),                            # attn LN gamma
            pl.BlockSpec((1, dim), c2),                            # attn LN beta
            pl.BlockSpec((heads, dim, dim_head), c3),              # Wq (per-head)
            pl.BlockSpec((dim, 2 * dim_head), c2),                 # Wkv (shared K/V)
            pl.BlockSpec((heads, dim_head, dim), c3),              # Wo (per-head)
            pl.BlockSpec((1, dim), c2),                            # to_out bias
            pl.BlockSpec((heads, n, n), c3),                       # T5 rel-pos bias
            pl.BlockSpec((1, dim), c2),                            # ff LN gamma
            pl.BlockSpec((1, dim), c2),                            # ff LN beta
            pl.BlockSpec((dim, inner_ff), c2),                     # W1 value path
            pl.BlockSpec((1, inner_ff), c2),                       # b1 value path
            pl.BlockSpec((dim, inner_ff), c2),                     # W1 gate path
            pl.BlockSpec((1, inner_ff), c2),                       # b1 gate path
            pl.BlockSpec((inner_ff, dim), c2),                     # W2
            pl.BlockSpec((1, dim), c2),                            # b2
        ],
        out_specs=pl.BlockSpec((1, n, dim), lambda b: (b, 0, 0)),
        input_output_aliases={0: 0},                               # residual in-place
        compiler_params=pltpu.CompilerParams(dimension_semantics=("parallel",)),
    )(x, attn_p["ln_g"], attn_p["ln_b"], wq3, wkv, wo3, attn_p["bo"], bias,
      ff_p["ln_g"], ff_p["ln_b"], w1v, b1v, w1g, b1g, w2, ff_p["b2"])


# T5 relative position bias table -> (heads, n, n).  Glue (embedding gather) in plain JAX.
def t5_rel_bias(n, emb, num_buckets=32, max_distance=128):
    q_pos = jnp.arange(n)
    k_pos = jnp.arange(n)
    rel = k_pos[None, :] - q_pos[:, None]
    neg = jnp.maximum(-rel, 0)
    max_exact = num_buckets // 2
    is_small = neg < max_exact
    val_if_large = max_exact + (
        jnp.log(neg.astype(jnp.float32) / max_exact)
        / math.log(max_distance / max_exact)
        * (num_buckets - max_exact)
    ).astype(jnp.int32)
    val_if_large = jnp.minimum(val_if_large, num_buckets - 1)
    bucket = jnp.where(is_small, neg, val_if_large)
    values = emb[bucket]                       # (n, n, heads)
    return jnp.transpose(values, (2, 0, 1))    # (heads, n, n)


def init_params(key, dim, depth, heads, dim_head, num_buckets=32):
    inner_attn = heads * dim_head
    inner_ff = dim * 4
    layers = []
    for _ in range(depth):
        keys = jax.random.split(key, 8)
        key = keys[-1]
        attn = {
            "ln_g": jnp.ones((1, dim), jnp.float32),
            "ln_b": jnp.zeros((1, dim), jnp.float32),
            "wq": jax.random.normal(keys[0], (dim, inner_attn), jnp.float32) * 0.02,
            "wkv": jax.random.normal(keys[1], (dim, 2 * dim_head), jnp.float32) * 0.02,
            "wo": jax.random.normal(keys[2], (inner_attn, dim), jnp.float32) * 0.02,
            "bo": jnp.zeros((1, dim), jnp.float32),
            "rel_emb": jax.random.normal(keys[3], (num_buckets, heads), jnp.float32),
        }
        ff = {
            "ln_g": jnp.ones((1, dim), jnp.float32),
            "ln_b": jnp.zeros((1, dim), jnp.float32),
            "w1": jax.random.normal(keys[4], (dim, 2 * inner_ff), jnp.float32) * 0.02,
            "b1": jnp.zeros((1, 2 * inner_ff), jnp.float32),
            "w2": jax.random.normal(keys[5], (inner_ff, dim), jnp.float32) * 0.02,
            "b2": jnp.zeros((1, dim), jnp.float32),
        }
        layers.append((attn, ff))
    return layers


def transformer_forward(x, layers, *, heads, dim_head):
    n = x.shape[1]
    for attn_p, ff_p in layers:
        bias = t5_rel_bias(n, attn_p["rel_emb"])
        x = lamda_layer(x, attn_p, ff_p, bias, heads=heads, dim_head=dim_head)
    return x


if __name__ == "__main__":
    dim, depth, heads, dim_head = 32, 2, 4, 16
    batch, seq = 2, 8

    key = jax.random.PRNGKey(0)
    k_x, k_p = jax.random.split(key)
    x = jax.random.normal(k_x, (batch, seq, dim), jnp.float32)
    layers = init_params(k_p, dim, depth, heads, dim_head)

    fwd = jax.jit(functools.partial(transformer_forward, heads=heads, dim_head=dim_head))
    out = fwd(x, layers)
    jax.block_until_ready(out)
    assert out.shape == (batch, seq, dim)
    print("KERNEL_OK")
</pallas_src>

<mosaic_0001>
module attributes {stable_mosaic.version = 11 : i64} {
  func.func @kernel(%arg0: i32, %arg1: memref<1x8x32xf32, #tpu.memory_space<vmem>>, %arg2: memref<1x32xf32, #tpu.memory_space<vmem>>, %arg3: memref<1x32xf32, #tpu.memory_space<vmem>>, %arg4: memref<4x32x16xbf16, #tpu.memory_space<vmem>>, %arg5: memref<32x32xbf16, #tpu.memory_space<vmem>>, %arg6: memref<4x16x32xbf16, #tpu.memory_space<vmem>>, %arg7: memref<1x32xf32, #tpu.memory_space<vmem>>, %arg8: memref<4x8x8xf32, #tpu.memory_space<vmem>>, %arg9: memref<1x32xf32, #tpu.memory_space<vmem>>, %arg10: memref<1x32xf32, #tpu.memory_space<vmem>>, %arg11: memref<32x128xbf16, #tpu.memory_space<vmem>>, %arg12: memref<1x128xf32, #tpu.memory_space<vmem>>, %arg13: memref<32x128xbf16, #tpu.memory_space<vmem>>, %arg14: memref<1x128xf32, #tpu.memory_space<vmem>>, %arg15: memref<128x32xbf16, #tpu.memory_space<vmem>>, %arg16: memref<1x32xf32, #tpu.memory_space<vmem>>, %arg17: memref<1x8x32xf32, #tpu.memory_space<vmem>>) attributes {dimension_semantics = [#tpu.dimension_semantics<parallel>], iteration_bounds = array<i64: 2>, scalar_prefetch = 0 : i64, scratch_operands = 0 : i64, tpu.core_type = #tpu.core_type<tc>, window_params = [{transform_indices = @transform_0, window_bounds = array<i64: 1, 8, 32>}, {pipeline_mode = #tpu.pipeline_mode<synchronous>, transform_indices = @transform_1, window_bounds = array<i64: 1, 32>}, {pipeline_mode = #tpu.pipeline_mode<synchronous>, transform_indices = @transform_2, window_bounds = array<i64: 1, 32>}, {pipeline_mode = #tpu.pipeline_mode<synchronous>, transform_indices = @transform_3, window_bounds = array<i64: 4, 32, 16>}, {pipeline_mode = #tpu.pipeline_mode<synchronous>, transform_indices = @transform_4, window_bounds = array<i64: 32, 32>}, {pipeline_mode = #tpu.pipeline_mode<synchronous>, transform_indices = @transform_5, window_bounds = array<i64: 4, 16, 32>}, {pipeline_mode = #tpu.pipeline_mode<synchronous>, transform_indices = @transform_6, window_bounds = array<i64: 1, 32>}, {pipeline_mode = #tpu.pipeline_mode<synchronous>, transform_indices = @transform_7, window_bounds = array<i64: 4, 8, 8>}, {pipeline_mode = #tpu.pipeline_mode<synchronous>, transform_indices = @transform_8, window_bounds = array<i64: 1, 32>}, {pipeline_mode = #tpu.pipeline_mode<synchronous>, transform_indices = @transform_9, window_bounds = array<i64: 1, 32>}, {pipeline_mode = #tpu.pipeline_mode<synchronous>, transform_indices = @transform_10, window_bounds = array<i64: 32, 128>}, {pipeline_mode = #tpu.pipeline_mode<synchronous>, transform_indices = @transform_11, window_bounds = array<i64: 1, 128>}, {pipeline_mode = #tpu.pipeline_mode<synchronous>, transform_indices = @transform_12, window_bounds = array<i64: 32, 128>}, {pipeline_mode = #tpu.pipeline_mode<synchronous>, transform_indices = @transform_13, window_bounds = array<i64: 1, 128>}, {pipeline_mode = #tpu.pipeline_mode<synchronous>, transform_indices = @transform_14, window_bounds = array<i64: 128, 32>}, {pipeline_mode = #tpu.pipeline_mode<synchronous>, transform_indices = @transform_15, window_bounds = array<i64: 1, 32>}, {transform_indices = @transform_16, window_bounds = array<i64: 1, 8, 32>}]} {
    %c0 = arith.constant 0 : index
    %c0_0 = arith.constant 0 : index
    %c0_1 = arith.constant 0 : index
    %0 = vector.load %arg1[%c0, %c0_0, %c0_1] : memref<1x8x32xf32, #tpu.memory_space<vmem>>, vector<1x8x32xf32>
    %1 = vector.shape_cast %0 : vector<1x8x32xf32> to vector<8x32xf32>
    %c0_2 = arith.constant 0 : index
    %c0_3 = arith.constant 0 : index
    %2 = vector.load %arg2[%c0_2, %c0_3] : memref<1x32xf32, #tpu.memory_space<vmem>>, vector<1x32xf32>
    %3 = vector.shape_cast %2 : vector<1x32xf32> to vector<32xf32>
    %c0_4 = arith.constant 0 : index
    %c0_5 = arith.constant 0 : index
    %4 = vector.load %arg3[%c0_4, %c0_5] : memref<1x32xf32, #tpu.memory_space<vmem>>, vector<1x32xf32>
    %5 = vector.shape_cast %4 : vector<1x32xf32> to vector<32xf32>
    %cst = arith.constant dense<0.000000e+00> : vector<8xf32>
    %6 = vector.multi_reduction <add>, %1, %cst [1] : vector<8x32xf32> to vector<8xf32>
    %7 = vector.shape_cast %6 : vector<8xf32> to vector<8x1xf32>
    %cst_6 = arith.constant 3.200000e+01 : f32
    %8 = vector.broadcast %cst_6 : f32 to vector<8x1xf32>
    %9 = arith.divf %7, %8 : vector<8x1xf32>
    %10 = vector.broadcast %9 : vector<8x1xf32> to vector<8x32xf32>
    %11 = arith.subf %1, %10 : vector<8x32xf32>
    %12 = arith.mulf %11, %11 : vector<8x32xf32>
    %cst_7 = arith.constant dense<0.000000e+00> : vector<8xf32>
    %13 = vector.multi_reduction <add>, %12, %cst_7 [1] : vector<8x32xf32> to vector<8xf32>
    %14 = vector.shape_cast %13 : vector<8xf32> to vector<8x1xf32>
    %cst_8 = arith.constant 3.200000e+01 : f32
    %15 = vector.broadcast %cst_8 : f32 to vector<8x1xf32>
    %16 = arith.divf %14, %15 : vector<8x1xf32>
    %17 = vector.broadcast %9 : vector<8x1xf32> to vector<8x32xf32>
    %18 = arith.subf %1, %17 : vector<8x32xf32>
    %cst_9 = arith.constant 9.99999974E-6 : f32
    %19 = vector.broadcast %cst_9 : f32 to vector<8x1xf32>
    %20 = arith.addf %16, %19 : vector<8x1xf32>
    %21 = math.rsqrt %20 : vector<8x1xf32>
    %22 = vector.broadcast %21 : vector<8x1xf32> to vector<8x32xf32>
    %23 = arith.mulf %18, %22 : vector<8x32xf32>
    %24 = vector.shape_cast %3 : vector<32xf32> to vector<1x32xf32>
    %25 = vector.broadcast %24 : vector<1x32xf32> to vector<8x32xf32>
    %26 = arith.mulf %23, %25 : vector<8x32xf32>
    %27 = vector.shape_cast %5 : vector<32xf32> to vector<1x32xf32>
    %28 = vector.broadcast %27 : vector<1x32xf32> to vector<8x32xf32>
    %29 = arith.addf %26, %28 : vector<8x32xf32>
    %30 = arith.truncf %29 : vector<8x32xf32> to vector<8x32xbf16>
    %c0_10 = arith.constant 0 : index
    %c0_11 = arith.constant 0 : index
    %31 = vector.load %arg5[%c0_10, %c0_11] : memref<32x32xbf16, #tpu.memory_space<vmem>>, vector<32x32xbf16>
    %cst_12 = arith.constant dense<0.000000e+00> : vector<8x32xf32>
    %32 = tpu.matmul %30, %31, %cst_12 {dimension_numbers = #tpu.dot_dimension_numbers<[1], [0], [0], [1], [0, 0, 1, 1], [], []>} : vector<8x32xbf16>, vector<32x32xbf16>, vector<8x32xf32> -> vector<8x32xf32>
    %33 = vector.extract_strided_slice %32 {offsets = [0, 0], sizes = [8, 16], strides = [1, 1]} : vector<8x32xf32> to vector<8x16xf32>
    %34 = arith.truncf %33 : vector<8x16xf32> to vector<8x16xbf16>
    %35 = vector.extract_strided_slice %32 {offsets = [0, 16], sizes = [8, 16], strides = [1, 1]} : vector<8x32xf32> to vector<8x16xf32>
    %36 = arith.truncf %35 : vector<8x16xf32> to vector<8x16xbf16>
    %37 = vector.shape_cast %30 : vector<8x32xbf16> to vector<1x8x32xbf16>
    %38 = vector.broadcast %37 : vector<1x8x32xbf16> to vector<4x8x32xbf16>
    %c0_13 = arith.constant 0 : index
    %c0_14 = arith.constant 0 : index
    %c0_15 = arith.constant 0 : index
    %39 = vector.load %arg4[%c0_13, %c0_14, %c0_15] : memref<4x32x16xbf16, #tpu.memory_space<vmem>>, vector<4x32x16xbf16>
    "tpu.trace_start"() <{level = 10 : i32, message = "hnd,hde->hne"}> : () -> ()
    %cst_16 = arith.constant dense<0.000000e+00> : vector<4x8x16xf32>
    %40 = tpu.matmul %38, %39, %cst_16 {dimension_numbers = #tpu.dot_dimension_numbers<[2], [1], [1], [2], [0, 0, 0, 1, 1, 2], [0], [0]>} : vector<4x8x32xbf16>, vector<4x32x16xbf16>, vector<4x8x16xf32> -> vector<4x8x16xf32>
    "tpu.trace_stop"() : () -> ()
    %cst_17 = arith.constant 2.500000e-01 : f32
    %41 = vector.broadcast %cst_17 : f32 to vector<4x8x16xf32>
    %42 = arith.mulf %40, %41 : vector<4x8x16xf32>
    %43 = arith.truncf %42 : vector<4x8x16xf32> to vector<4x8x16xbf16>
    %44 = vector.shape_cast %34 : vector<8x16xbf16> to vector<1x8x16xbf16>
    %45 = vector.broadcast %44 : vector<1x8x16xbf16> to vector<4x8x16xbf16>
    %46 = vector.shape_cast %36 : vector<8x16xbf16> to vector<1x8x16xbf16>
    %47 = vector.broadcast %46 : vector<1x8x16xbf16> to vector<4x8x16xbf16>
    "tpu.trace_start"() <{level = 10 : i32, message = "hqe,hke->hqk"}> : () -> ()
    %cst_18 = arith.constant dense<0.000000e+00> : vector<4x8x8xf32>
    %48 = tpu.matmul %43, %45, %cst_18 {dimension_numbers = #tpu.dot_dimension_numbers<[2], [2], [1], [1], [0, 0, 0, 1, 1, 1], [0], [0]>} : vector<4x8x16xbf16>, vector<4x8x16xbf16>, vector<4x8x8xf32> -> vector<4x8x8xf32>
    "tpu.trace_stop"() : () -> ()
    %c0_19 = arith.constant 0 : index
    %c0_20 = arith.constant 0 : index
    %c0_21 = arith.constant 0 : index
    %49 = vector.load %arg8[%c0_19, %c0_20, %c0_21] : memref<4x8x8xf32, #tpu.memory_space<vmem>>, vector<4x8x8xf32>
    %cst_22 = arith.constant 4.000000e+00 : f32
    %50 = vector.broadcast %cst_22 : f32 to vector<4x8x8xf32>
    %51 = arith.mulf %49, %50 : vector<4x8x8xf32>
    %52 = arith.addf %48, %51 : vector<4x8x8xf32>
    %53 = tpu.iota {dimensions = array<i32: 0>} : vector<8x8xi32>
    %54 = tpu.iota {dimensions = array<i32: 1>} : vector<8x8xi32>
    %55 = arith.cmpi sgt, %54, %53 : vector<8x8xi32>
    %56 = vector.shape_cast %55 : vector<8x8xi1> to vector<1x8x8xi1>
    %57 = vector.shape_cast %56 : vector<1x8x8xi1> to vector<1x8x8xi1>
    %58 = vector.broadcast %57 : vector<1x8x8xi1> to vector<4x8x8xi1>
    %cst_23 = arith.constant -3.40282347E+38 : f32
    %59 = vector.broadcast %cst_23 : f32 to vector<4x8x8xf32>
    %60 = arith.select %58, %59, %52 : vector<4x8x8xi1>, vector<4x8x8xf32>
    %cst_24 = arith.constant dense<0xFF800000> : vector<4x8xf32>
    %61 = vector.multi_reduction <maximumf>, %60, %cst_24 [2] : vector<4x8x8xf32> to vector<4x8xf32>
    %62 = vector.shape_cast %61 : vector<4x8xf32> to vector<4x8x1xf32>
    %63 = vector.broadcast %62 : vector<4x8x1xf32> to vector<4x8x8xf32>
    %64 = arith.subf %60, %63 : vector<4x8x8xf32>
    %65 = math.exp %64 : vector<4x8x8xf32>
    %cst_25 = arith.constant dense<0.000000e+00> : vector<4x8xf32>
    %66 = vector.multi_reduction <add>, %65, %cst_25 [2] : vector<4x8x8xf32> to vector<4x8xf32>
    %67 = vector.shape_cast %66 : vector<4x8xf32> to vector<4x8x1xf32>
    %68 = tpu.reciprocal %67 {approx = true} : vector<4x8x1xf32> -> vector<4x8x1xf32>
    %69 = vector.broadcast %68 : vector<4x8x1xf32> to vector<4x8x8xf32>
    %70 = arith.mulf %65, %69 : vector<4x8x8xf32>
    %71 = arith.truncf %70 : vector<4x8x8xf32> to vector<4x8x8xbf16>
    "tpu.trace_start"() <{level = 10 : i32, message = "hqk,hke->hqe"}> : () -> ()
    %cst_26 = arith.constant dense<0.000000e+00> : vector<4x8x16xf32>
    %72 = tpu.matmul %71, %47, %cst_26 {dimension_numbers = #tpu.dot_dimension_numbers<[2], [1], [1], [2], [0, 0, 0, 1, 1, 2], [0], [0]>} : vector<4x8x8xbf16>, vector<4x8x16xbf16>, vector<4x8x16xf32> -> vector<4x8x16xf32>
    "tpu.trace_stop"() : () -> ()
    %73 = arith.truncf %72 : vector<4x8x16xf32> to vector<4x8x16xbf16>
    %c0_27 = arith.constant 0 : index
    %c0_28 = arith.constant 0 : index
    %c0_29 = arith.constant 0 : index
    %74 = vector.load %arg6[%c0_27, %c0_28, %c0_29] : memref<4x16x32xbf16, #tpu.memory_space<vmem>>, vector<4x16x32xbf16>
    "tpu.trace_start"() <{level = 10 : i32, message = "hqe,hed->hqd"}> : () -> ()
    %cst_30 = arith.constant dense<0.000000e+00> : vector<4x8x32xf32>
    %75 = tpu.matmul %73, %74, %cst_30 {dimension_numbers = #tpu.dot_dimension_numbers<[2], [1], [1], [2], [0, 0, 0, 1, 1, 2], [0], [0]>} : vector<4x8x16xbf16>, vector<4x16x32xbf16>, vector<4x8x32xf32> -> vector<4x8x32xf32>
    "tpu.trace_stop"() : () -> ()
    %cst_31 = arith.constant dense<0.000000e+00> : vector<8x32xf32>
    %76 = vector.multi_reduction <add>, %75, %cst_31 [0] : vector<4x8x32xf32> to vector<8x32xf32>
    %c0_32 = arith.constant 0 : index
    %c0_33 = arith.constant 0 : index
    %77 = vector.load %arg7[%c0_32, %c0_33] : memref<1x32xf32, #tpu.memory_space<vmem>>, vector<1x32xf32>
    %78 = vector.shape_cast %77 : vector<1x32xf32> to vector<32xf32>
    %79 = vector.shape_cast %78 : vector<32xf32> to vector<1x32xf32>
    %80 = vector.broadcast %79 : vector<1x32xf32> to vector<8x32xf32>
    %81 = arith.addf %76, %80 : vector<8x32xf32>
    %82 = arith.addf %81, %1 : vector<8x32xf32>
    %c0_34 = arith.constant 0 : index
    %c0_35 = arith.constant 0 : index
    %83 = vector.load %arg9[%c0_34, %c0_35] : memref<1x32xf32, #tpu.memory_space<vmem>>, vector<1x32xf32>
    %84 = vector.shape_cast %83 : vector<1x32xf32> to vector<32xf32>
    %c0_36 = arith.constant 0 : index
    %c0_37 = arith.constant 0 : index
    %85 = vector.load %arg10[%c0_36, %c0_37] : memref<1x32xf32, #tpu.memory_space<vmem>>, vector<1x32xf32>
    %86 = vector.shape_cast %85 : vector<1x32xf32> to vector<32xf32>
    %cst_38 = arith.constant dense<0.000000e+00> : vector<8xf32>
    %87 = vector.multi_reduction <add>, %82, %cst_38 [1] : vector<8x32xf32> to vector<8xf32>
    %88 = vector.shape_cast %87 : vector<8xf32> to vector<8x1xf32>
    %cst_39 = arith.constant 3.200000e+01 : f32
    %89 = vector.broadcast %cst_39 : f32 to vector<8x1xf32>
    %90 = arith.divf %88, %89 : vector<8x1xf32>
    %91 = vector.broadcast %90 : vector<8x1xf32> to vector<8x32xf32>
    %92 = arith.subf %82, %91 : vector<8x32xf32>
    %93 = arith.mulf %92, %92 : vector<8x32xf32>
    %cst_40 = arith.constant dense<0.000000e+00> : vector<8xf32>
    %94 = vector.multi_reduction <add>, %93, %cst_40 [1] : vector<8x32xf32> to vector<8xf32>
    %95 = vector.shape_cast %94 : vector<8xf32> to vector<8x1xf32>
    %cst_41 = arith.constant 3.200000e+01 : f32
    %96 = vector.broadcast %cst_41 : f32 to vector<8x1xf32>
    %97 = arith.divf %95, %96 : vector<8x1xf32>
    %98 = vector.broadcast %90 : vector<8x1xf32> to vector<8x32xf32>
    %99 = arith.subf %82, %98 : vector<8x32xf32>
    %cst_42 = arith.constant 9.99999974E-6 : f32
    %100 = vector.broadcast %cst_42 : f32 to vector<8x1xf32>
    %101 = arith.addf %97, %100 : vector<8x1xf32>
    %102 = math.rsqrt %101 : vector<8x1xf32>
    %103 = vector.broadcast %102 : vector<8x1xf32> to vector<8x32xf32>
    %104 = arith.mulf %99, %103 : vector<8x32xf32>
    %105 = vector.shape_cast %84 : vector<32xf32> to vector<1x32xf32>
    %106 = vector.broadcast %105 : vector<1x32xf32> to vector<8x32xf32>
    %107 = arith.mulf %104, %106 : vector<8x32xf32>
    %108 = vector.shape_cast %86 : vector<32xf32> to vector<1x32xf32>
    %109 = vector.broadcast %108 : vector<1x32xf32> to vector<8x32xf32>
    %110 = arith.addf %107, %109 : vector<8x32xf32>
    %111 = arith.truncf %110 : vector<8x32xf32> to vector<8x32xbf16>
    %c0_43 = arith.constant 0 : index
    %c0_44 = arith.constant 0 : index
    %112 = vector.load %arg11[%c0_43, %c0_44] : memref<32x128xbf16, #tpu.memory_space<vmem>>, vector<32x128xbf16>
    %cst_45 = arith.constant dense<0.000000e+00> : vector<8x128xf32>
    %113 = tpu.matmul %111, %112, %cst_45 {dimension_numbers = #tpu.dot_dimension_numbers<[1], [0], [0], [1], [0, 0, 1, 1], [], []>} : vector<8x32xbf16>, vector<32x128xbf16>, vector<8x128xf32> -> vector<8x128xf32>
    %c0_46 = arith.constant 0 : index
    %c0_47 = arith.constant 0 : index
    %114 = vector.load %arg12[%c0_46, %c0_47] : memref<1x128xf32, #tpu.memory_space<vmem>>, vector<1x128xf32>
    %115 = vector.shape_cast %114 : vector<1x128xf32> to vector<128xf32>
    %116 = vector.shape_cast %115 : vector<128xf32> to vector<1x128xf32>
    %117 = vector.broadcast %116 : vector<1x128xf32> to vector<8x128xf32>
    %118 = arith.addf %113, %117 : vector<8x128xf32>
    %c0_48 = arith.constant 0 : index
    %c0_49 = arith.constant 0 : index
    %119 = vector.load %arg13[%c0_48, %c0_49] : memref<32x128xbf16, #tpu.memory_space<vmem>>, vector<32x128xbf16>
    %cst_50 = arith.constant dense<0.000000e+00> : vector<8x128xf32>
    %120 = tpu.matmul %111, %119, %cst_50 {dimension_numbers = #tpu.dot_dimension_numbers<[1], [0], [0], [1], [0, 0, 1, 1], [], []>} : vector<8x32xbf16>, vector<32x128xbf16>, vector<8x128xf32> -> vector<8x128xf32>
    %c0_51 = arith.constant 0 : index
    %c0_52 = arith.constant 0 : index
    %121 = vector.load %arg14[%c0_51, %c0_52] : memref<1x128xf32, #tpu.memory_space<vmem>>, vector<1x128xf32>
    %122 = vector.shape_cast %121 : vector<1x128xf32> to vector<128xf32>
    %123 = vector.shape_cast %122 : vector<128xf32> to vector<1x128xf32>
    %124 = vector.broadcast %123 : vector<1x128xf32> to vector<8x128xf32>
    %125 = arith.addf %120, %124 : vector<8x128xf32>
    %cst_53 = arith.constant 5.000000e-01 : f32
    %126 = vector.broadcast %cst_53 : f32 to vector<8x128xf32>
    %127 = arith.mulf %126, %125 : vector<8x128xf32>
    %cst_54 = arith.constant 0.707106769 : f32
    %128 = vector.broadcast %cst_54 : f32 to vector<8x128xf32>
    %129 = arith.mulf %125, %128 : vector<8x128xf32>
    %130 = math.erf %129 : vector<8x128xf32>
    %cst_55 = arith.constant 1.000000e+00 : f32
    %131 = vector.broadcast %cst_55 : f32 to vector<8x128xf32>
    %132 = arith.addf %131, %130 : vector<8x128xf32>
    %133 = arith.mulf %127, %132 : vector<8x128xf32>
    %134 = arith.mulf %118, %133 : vector<8x128xf32>
    %135 = arith.truncf %134 : vector<8x128xf32> to vector<8x128xbf16>
    %c0_56 = arith.constant 0 : index
    %c0_57 = arith.constant 0 : index
    %136 = vector.load %arg15[%c0_56, %c0_57] : memref<128x32xbf16, #tpu.memory_space<vmem>>, vector<128x32xbf16>
    %cst_58 = arith.constant dense<0.000000e+00> : vector<8x32xf32>
    %137 = tpu.matmul %135, %136, %cst_58 {dimension_numbers = #tpu.dot_dimension_numbers<[1], [0], [0], [1], [0, 0, 1, 1], [], []>} : vector<8x128xbf16>, vector<128x32xbf16>, vector<8x32xf32> -> vector<8x32xf32>
    %c0_59 = arith.constant 0 : index
    %c0_60 = arith.constant 0 : index
    %138 = vector.load %arg16[%c0_59, %c0_60] : memref<1x32xf32, #tpu.memory_space<vmem>>, vector<1x32xf32>
    %139 = vector.shape_cast %138 : vector<1x32xf32> to vector<32xf32>
    %140 = vector.shape_cast %139 : vector<32xf32> to vector<1x32xf32>
    %141 = vector.broadcast %140 : vector<1x32xf32> to vector<8x32xf32>
    %142 = arith.addf %137, %141 : vector<8x32xf32>
    %143 = arith.addf %142, %82 : vector<8x32xf32>
    %c0_61 = arith.constant 0 : index
    %c0_62 = arith.constant 0 : index
    %c0_63 = arith.constant 0 : index
    %144 = vector.load %arg17[%c0_61, %c0_62, %c0_63] : memref<1x8x32xf32, #tpu.memory_space<vmem>>, vector<1x8x32xf32>
    %145 = vector.shape_cast %144 : vector<1x8x32xf32> to vector<8x32xf32>
    %146 = vector.shape_cast %143 : vector<8x32xf32> to vector<1x8x32xf32>
    tpu.vector_store %arg17[%c0_61, %c0_62, %c0_63], %146 {strides = array<i32>} : memref<1x8x32xf32, #tpu.memory_space<vmem>>, vector<1x8x32xf32>,
    return
  }
  func.func @transform_0(%arg0: i32) -> (i32, i32, i32) {
    %c0_i32 = arith.constant 0 : i32
    %c0_i32_0 = arith.constant 0 : i32
    %c0_i32_1 = arith.constant 0 : i32
    return %arg0, %c0_i32, %c0_i32_0 : i32, i32, i32
  }
  func.func @transform_1(%arg0: i32) -> (i32, i32) {
    %c0_i32 = arith.constant 0 : i32
    %c0_i32_0 = arith.constant 0 : i32
    %c0_i32_1 = arith.constant 0 : i32
    return %c0_i32, %c0_i32_0 : i32, i32
  }
  func.func @transform_2(%arg0: i32) -> (i32, i32) {
    %c0_i32 = arith.constant 0 : i32
    %c0_i32_0 = arith.constant 0 : i32
    %c0_i32_1 = arith.constant 0 : i32
    return %c0_i32, %c0_i32_0 : i32, i32
  }
  func.func @transform_3(%arg0: i32) -> (i32, i32, i32) {
    %c0_i32 = arith.constant 0 : i32
    %c0_i32_0 = arith.constant 0 : i32
    %c0_i32_1 = arith.constant 0 : i32
    %c0_i32_2 = arith.constant 0 : i32
    return %c0_i32, %c0_i32_0, %c0_i32_1 : i32, i32, i32
  }
  func.func @transform_4(%arg0: i32) -> (i32, i32) {
    %c0_i32 = arith.constant 0 : i32
    %c0_i32_0 = arith.constant 0 : i32
    %c0_i32_1 = arith.constant 0 : i32
    return %c0_i32, %c0_i32_0 : i32, i32
  }
  func.func @transform_5(%arg0: i32) -> (i32, i32, i32) {
    %c0_i32 = arith.constant 0 : i32
    %c0_i32_0 = arith.constant 0 : i32
    %c0_i32_1 = arith.constant 0 : i32
    %c0_i32_2 = arith.constant 0 : i32
    return %c0_i32, %c0_i32_0, %c0_i32_1 : i32, i32, i32
  }
  func.func @transform_6(%arg0: i32) -> (i32, i32) {
    %c0_i32 = arith.constant 0 : i32
    %c0_i32_0 = arith.constant 0 : i32
    %c0_i32_1 = arith.constant 0 : i32
    return %c0_i32, %c0_i32_0 : i32, i32
  }
  func.func @transform_7(%arg0: i32) -> (i32, i32, i32) {
    %c0_i32 = arith.constant 0 : i32
    %c0_i32_0 = arith.constant 0 : i32
    %c0_i32_1 = arith.constant 0 : i32
    %c0_i32_2 = arith.constant 0 : i32
    return %c0_i32, %c0_i32_0, %c0_i32_1 : i32, i32, i32
  }
  func.func @transform_8(%arg0: i32) -> (i32, i32) {
    %c0_i32 = arith.constant 0 : i32
    %c0_i32_0 = arith.constant 0 : i32
    %c0_i32_1 = arith.constant 0 : i32
    return %c0_i32, %c0_i32_0 : i32, i32
  }
  func.func @transform_9(%arg0: i32) -> (i32, i32) {
    %c0_i32 = arith.constant 0 : i32
    %c0_i32_0 = arith.constant 0 : i32
    %c0_i32_1 = arith.constant 0 : i32
    return %c0_i32, %c0_i32_0 : i32, i32
  }
  func.func @transform_10(%arg0: i32) -> (i32, i32) {
    %c0_i32 = arith.constant 0 : i32
    %c0_i32_0 = arith.constant 0 : i32
    %c0_i32_1 = arith.constant 0 : i32
    return %c0_i32, %c0_i32_0 : i32, i32
  }
  func.func @transform_11(%arg0: i32) -> (i32, i32) {
    %c0_i32 = arith.constant 0 : i32
    %c0_i32_0 = arith.constant 0 : i32
    %c0_i32_1 = arith.constant 0 : i32
    return %c0_i32, %c0_i32_0 : i32, i32
  }
  func.func @transform_12(%arg0: i32) -> (i32, i32) {
    %c0_i32 = arith.constant 0 : i32
    %c0_i32_0 = arith.constant 0 : i32
    %c0_i32_1 = arith.constant 0 : i32
    return %c0_i32, %c0_i32_0 : i32, i32
  }
  func.func @transform_13(%arg0: i32) -> (i32, i32) {
    %c0_i32 = arith.constant 0 : i32
    %c0_i32_0 = arith.constant 0 : i32
    %c0_i32_1 = arith.constant 0 : i32
    return %c0_i32, %c0_i32_0 : i32, i32
  }
  func.func @transform_14(%arg0: i32) -> (i32, i32) {
    %c0_i32 = arith.constant 0 : i32
    %c0_i32_0 = arith.constant 0 : i32
    %c0_i32_1 = arith.constant 0 : i32
    return %c0_i32, %c0_i32_0 : i32, i32
  }
  func.func @transform_15(%arg0: i32) -> (i32, i32) {
    %c0_i32 = arith.constant 0 : i32
    %c0_i32_0 = arith.constant 0 : i32
    %c0_i32_1 = arith.constant 0 : i32
    return %c0_i32, %c0_i32_0 : i32, i32
  }
  func.func @transform_16(%arg0: i32) -> (i32, i32, i32) {
    %c0_i32 = arith.constant 0 : i32
    %c0_i32_0 = arith.constant 0 : i32
    %c0_i32_1 = arith.constant 0 : i32
    return %arg0, %c0_i32, %c0_i32_0 : i32, i32, i32
  }
}

module attributes {stable_mosaic.version = 11 : i64} {
  func.func @kernel(%arg0: i32, %arg1: memref<1x8x32xf32, #tpu.memory_space<vmem>>, %arg2: memref<1x32xf32, #tpu.memory_space<vmem>>, %arg3: memref<1x32xf32, #tpu.memory_space<vmem>>, %arg4: memref<4x32x16xbf16, #tpu.memory_space<vmem>>, %arg5: memref<32x32xbf16, #tpu.memory_space<vmem>>, %arg6: memref<4x16x32xbf16, #tpu.memory_space<vmem>>, %arg7: memref<1x32xf32, #tpu.memory_space<vmem>>, %arg8: memref<4x8x8xf32, #tpu.memory_space<vmem>>, %arg9: memref<1x32xf32, #tpu.memory_space<vmem>>, %arg10: memref<1x32xf32, #tpu.memory_space<vmem>>, %arg11: memref<32x128xbf16, #tpu.memory_space<vmem>>, %arg12: memref<1x128xf32, #tpu.memory_space<vmem>>, %arg13: memref<32x128xbf16, #tpu.memory_space<vmem>>, %arg14: memref<1x128xf32, #tpu.memory_space<vmem>>, %arg15: memref<128x32xbf16, #tpu.memory_space<vmem>>, %arg16: memref<1x32xf32, #tpu.memory_space<vmem>>, %arg17: memref<1x8x32xf32, #tpu.memory_space<vmem>>) attributes {dimension_semantics = [#tpu.dimension_semantics<parallel>], iteration_bounds = array<i64: 2>, scalar_prefetch = 0 : i64, scratch_operands = 0 : i64, tpu.core_type = #tpu.core_type<tc>, window_params = [{transform_indices = @transform_0, window_bounds = array<i64: 1, 8, 32>}, {pipeline_mode = #tpu.pipeline_mode<synchronous>, transform_indices = @transform_1, window_bounds = array<i64: 1, 32>}, {pipeline_mode = #tpu.pipeline_mode<synchronous>, transform_indices = @transform_2, window_bounds = array<i64: 1, 32>}, {pipeline_mode = #tpu.pipeline_mode<synchronous>, transform_indices = @transform_3, window_bounds = array<i64: 4, 32, 16>}, {pipeline_mode = #tpu.pipeline_mode<synchronous>, transform_indices = @transform_4, window_bounds = array<i64: 32, 32>}, {pipeline_mode = #tpu.pipeline_mode<synchronous>, transform_indices = @transform_5, window_bounds = array<i64: 4, 16, 32>}, {pipeline_mode = #tpu.pipeline_mode<synchronous>, transform_indices = @transform_6, window_bounds = array<i64: 1, 32>}, {pipeline_mode = #tpu.pipeline_mode<synchronous>, transform_indices = @transform_7, window_bounds = array<i64: 4, 8, 8>}, {pipeline_mode = #tpu.pipeline_mode<synchronous>, transform_indices = @transform_8, window_bounds = array<i64: 1, 32>}, {pipeline_mode = #tpu.pipeline_mode<synchronous>, transform_indices = @transform_9, window_bounds = array<i64: 1, 32>}, {pipeline_mode = #tpu.pipeline_mode<synchronous>, transform_indices = @transform_10, window_bounds = array<i64: 32, 128>}, {pipeline_mode = #tpu.pipeline_mode<synchronous>, transform_indices = @transform_11, window_bounds = array<i64: 1, 128>}, {pipeline_mode = #tpu.pipeline_mode<synchronous>, transform_indices = @transform_12, window_bounds = array<i64: 32, 128>}, {pipeline_mode = #tpu.pipeline_mode<synchronous>, transform_indices = @transform_13, window_bounds = array<i64: 1, 128>}, {pipeline_mode = #tpu.pipeline_mode<synchronous>, transform_indices = @transform_14, window_bounds = array<i64: 128, 32>}, {pipeline_mode = #tpu.pipeline_mode<synchronous>, transform_indices = @transform_15, window_bounds = array<i64: 1, 32>}, {transform_indices = @transform_16, window_bounds = array<i64: 1, 8, 32>}]} {
    %c0 = arith.constant 0 : index
    %c0_0 = arith.constant 0 : index
    %c0_1 = arith.constant 0 : index
    %0 = vector.load %arg1[%c0, %c0_0, %c0_1] : memref<1x8x32xf32, #tpu.memory_space<vmem>>, vector<1x8x32xf32>
    %1 = vector.shape_cast %0 : vector<1x8x32xf32> to vector<8x32xf32>
    %c0_2 = arith.constant 0 : index
    %c0_3 = arith.constant 0 : index
    %2 = vector.load %arg2[%c0_2, %c0_3] : memref<1x32xf32, #tpu.memory_space<vmem>>, vector<1x32xf32>
    %3 = vector.shape_cast %2 : vector<1x32xf32> to vector<32xf32>
    %c0_4 = arith.constant 0 : index
    %c0_5 = arith.constant 0 : index
    %4 = vector.load %arg3[%c0_4, %c0_5] : memref<1x32xf32, #tpu.memory_space<vmem>>, vector<1x32xf32>
    %5 = vector.shape_cast %4 : vector<1x32xf32> to vector<32xf32>
    %cst = arith.constant dense<0.000000e+00> : vector<8xf32>
    %6 = vector.multi_reduction <add>, %1, %cst [1] : vector<8x32xf32> to vector<8xf32>
    %7 = vector.shape_cast %6 : vector<8xf32> to vector<8x1xf32>
    %cst_6 = arith.constant 3.200000e+01 : f32
    %8 = vector.broadcast %cst_6 : f32 to vector<8x1xf32>
    %9 = arith.divf %7, %8 : vector<8x1xf32>
    %10 = vector.broadcast %9 : vector<8x1xf32> to vector<8x32xf32>
    %11 = arith.subf %1, %10 : vector<8x32xf32>
    %12 = arith.mulf %11, %11 : vector<8x32xf32>
    %cst_7 = arith.constant dense<0.000000e+00> : vector<8xf32>
    %13 = vector.multi_reduction <add>, %12, %cst_7 [1] : vector<8x32xf32> to vector<8xf32>
    %14 = vector.shape_cast %13 : vector<8xf32> to vector<8x1xf32>
    %cst_8 = arith.constant 3.200000e+01 : f32
    %15 = vector.broadcast %cst_8 : f32 to vector<8x1xf32>
    %16 = arith.divf %14, %15 : vector<8x1xf32>
    %17 = vector.broadcast %9 : vector<8x1xf32> to vector<8x32xf32>
    %18 = arith.subf %1, %17 : vector<8x32xf32>
    %cst_9 = arith.constant 9.99999974E-6 : f32
    %19 = vector.broadcast %cst_9 : f32 to vector<8x1xf32>
    %20 = arith.addf %16, %19 : vector<8x1xf32>
    %21 = math.rsqrt %20 : vector<8x1xf32>
    %22 = vector.broadcast %21 : vector<8x1xf32> to vector<8x32xf32>
    %23 = arith.mulf %18, %22 : vector<8x32xf32>
    %24 = vector.shape_cast %3 : vector<32xf32> to vector<1x32xf32>
    %25 = vector.broadcast %24 : vector<1x32xf32> to vector<8x32xf32>
    %26 = arith.mulf %23, %25 : vector<8x32xf32>
    %27 = vector.shape_cast %5 : vector<32xf32> to vector<1x32xf32>
    %28 = vector.broadcast %27 : vector<1x32xf32> to vector<8x32xf32>
    %29 = arith.addf %26, %28 : vector<8x32xf32>
    %30 = arith.truncf %29 : vector<8x32xf32> to vector<8x32xbf16>
    %c0_10 = arith.constant 0 : index
    %c0_11 = arith.constant 0 : index
    %31 = vector.load %arg5[%c0_10, %c0_11] : memref<32x32xbf16, #tpu.memory_space<vmem>>, vector<32x32xbf16>
    %cst_12 = arith.constant dense<0.000000e+00> : vector<8x32xf32>
    %32 = tpu.matmul %30, %31, %cst_12 {dimension_numbers = #tpu.dot_dimension_numbers<[1], [0], [0], [1], [0, 0, 1, 1], [], []>} : vector<8x32xbf16>, vector<32x32xbf16>, vector<8x32xf32> -> vector<8x32xf32>
    %33 = vector.extract_strided_slice %32 {offsets = [0, 0], sizes = [8, 16], strides = [1, 1]} : vector<8x32xf32> to vector<8x16xf32>
    %34 = arith.truncf %33 : vector<8x16xf32> to vector<8x16xbf16>
    %35 = vector.extract_strided_slice %32 {offsets = [0, 16], sizes = [8, 16], strides = [1, 1]} : vector<8x32xf32> to vector<8x16xf32>
    %36 = arith.truncf %35 : vector<8x16xf32> to vector<8x16xbf16>
    %37 = vector.shape_cast %30 : vector<8x32xbf16> to vector<1x8x32xbf16>
    %38 = vector.broadcast %37 : vector<1x8x32xbf16> to vector<4x8x32xbf16>
    %c0_13 = arith.constant 0 : index
    %c0_14 = arith.constant 0 : index
    %c0_15 = arith.constant 0 : index
    %39 = vector.load %arg4[%c0_13, %c0_14, %c0_15] : memref<4x32x16xbf16, #tpu.memory_space<vmem>>, vector<4x32x16xbf16>
    "tpu.trace_start"() <{level = 10 : i32, message = "hnd,hde->hne"}> : () -> ()
    %cst_16 = arith.constant dense<0.000000e+00> : vector<4x8x16xf32>
    %40 = tpu.matmul %38, %39, %cst_16 {dimension_numbers = #tpu.dot_dimension_numbers<[2], [1], [1], [2], [0, 0, 0, 1, 1, 2], [0], [0]>} : vector<4x8x32xbf16>, vector<4x32x16xbf16>, vector<4x8x16xf32> -> vector<4x8x16xf32>
    "tpu.trace_stop"() : () -> ()
    %cst_17 = arith.constant 2.500000e-01 : f32
    %41 = vector.broadcast %cst_17 : f32 to vector<4x8x16xf32>
    %42 = arith.mulf %40, %41 : vector<4x8x16xf32>
    %43 = arith.truncf %42 : vector<4x8x16xf32> to vector<4x8x16xbf16>
    %44 = vector.shape_cast %34 : vector<8x16xbf16> to vector<1x8x16xbf16>
    %45 = vector.broadcast %44 : vector<1x8x16xbf16> to vector<4x8x16xbf16>
    %46 = vector.shape_cast %36 : vector<8x16xbf16> to vector<1x8x16xbf16>
    %47 = vector.broadcast %46 : vector<1x8x16xbf16> to vector<4x8x16xbf16>
    "tpu.trace_start"() <{level = 10 : i32, message = "hqe,hke->hqk"}> : () -> ()
    %cst_18 = arith.constant dense<0.000000e+00> : vector<4x8x8xf32>
    %48 = tpu.matmul %43, %45, %cst_18 {dimension_numbers = #tpu.dot_dimension_numbers<[2], [2], [1], [1], [0, 0, 0, 1, 1, 1], [0], [0]>} : vector<4x8x16xbf16>, vector<4x8x16xbf16>, vector<4x8x8xf32> -> vector<4x8x8xf32>
    "tpu.trace_stop"() : () -> ()
    %c0_19 = arith.constant 0 : index
    %c0_20 = arith.constant 0 : index
    %c0_21 = arith.constant 0 : index
    %49 = vector.load %arg8[%c0_19, %c0_20, %c0_21] : memref<4x8x8xf32, #tpu.memory_space<vmem>>, vector<4x8x8xf32>
    %cst_22 = arith.constant 4.000000e+00 : f32
    %50 = vector.broadcast %cst_22 : f32 to vector<4x8x8xf32>
    %51 = arith.mulf %49, %50 : vector<4x8x8xf32>
    %52 = arith.addf %48, %51 : vector<4x8x8xf32>
    %53 = tpu.iota {dimensions = array<i32: 0>} : vector<8x8xi32>
    %54 = tpu.iota {dimensions = array<i32: 1>} : vector<8x8xi32>
    %55 = arith.cmpi sgt, %54, %53 : vector<8x8xi32>
    %56 = vector.shape_cast %55 : vector<8x8xi1> to vector<1x8x8xi1>
    %57 = vector.shape_cast %56 : vector<1x8x8xi1> to vector<1x8x8xi1>
    %58 = vector.broadcast %57 : vector<1x8x8xi1> to vector<4x8x8xi1>
    %cst_23 = arith.constant -3.40282347E+38 : f32
    %59 = vector.broadcast %cst_23 : f32 to vector<4x8x8xf32>
    %60 = arith.select %58, %59, %52 : vector<4x8x8xi1>, vector<4x8x8xf32>
    %cst_24 = arith.constant dense<0xFF800000> : vector<4x8xf32>
    %61 = vector.multi_reduction <maximumf>, %60, %cst_24 [2] : vector<4x8x8xf32> to vector<4x8xf32>
    %62 = vector.shape_cast %61 : vector<4x8xf32> to vector<4x8x1xf32>
    %63 = vector.broadcast %62 : vector<4x8x1xf32> to vector<4x8x8xf32>
    %64 = arith.subf %60, %63 : vector<4x8x8xf32>
    %65 = math.exp %64 : vector<4x8x8xf32>
    %cst_25 = arith.constant dense<0.000000e+00> : vector<4x8xf32>
    %66 = vector.multi_reduction <add>, %65, %cst_25 [2] : vector<4x8x8xf32> to vector<4x8xf32>
    %67 = vector.shape_cast %66 : vector<4x8xf32> to vector<4x8x1xf32>
    %68 = tpu.reciprocal %67 {approx = true} : vector<4x8x1xf32> -> vector<4x8x1xf32>
    %69 = vector.broadcast %68 : vector<4x8x1xf32> to vector<4x8x8xf32>
    %70 = arith.mulf %65, %69 : vector<4x8x8xf32>
    %71 = arith.truncf %70 : vector<4x8x8xf32> to vector<4x8x8xbf16>
    "tpu.trace_start"() <{level = 10 : i32, message = "hqk,hke->hqe"}> : () -> ()
    %cst_26 = arith.constant dense<0.000000e+00> : vector<4x8x16xf32>
    %72 = tpu.matmul %71, %47, %cst_26 {dimension_numbers = #tpu.dot_dimension_numbers<[2], [1], [1], [2], [0, 0, 0, 1, 1, 2], [0], [0]>} : vector<4x8x8xbf16>, vector<4x8x16xbf16>, vector<4x8x16xf32> -> vector<4x8x16xf32>
    "tpu.trace_stop"() : () -> ()
    %73 = arith.truncf %72 : vector<4x8x16xf32> to vector<4x8x16xbf16>
    %c0_27 = arith.constant 0 : index
    %c0_28 = arith.constant 0 : index
    %c0_29 = arith.constant 0 : index
    %74 = vector.load %arg6[%c0_27, %c0_28, %c0_29] : memref<4x16x32xbf16, #tpu.memory_space<vmem>>, vector<4x16x32xbf16>
    "tpu.trace_start"() <{level = 10 : i32, message = "hqe,hed->hqd"}> : () -> ()
    %cst_30 = arith.constant dense<0.000000e+00> : vector<4x8x32xf32>
    %75 = tpu.matmul %73, %74, %cst_30 {dimension_numbers = #tpu.dot_dimension_numbers<[2], [1], [1], [2], [0, 0, 0, 1, 1, 2], [0], [0]>} : vector<4x8x16xbf16>, vector<4x16x32xbf16>, vector<4x8x32xf32> -> vector<4x8x32xf32>
    "tpu.trace_stop"() : () -> ()
    %cst_31 = arith.constant dense<0.000000e+00> : vector<8x32xf32>
    %76 = vector.multi_reduction <add>, %75, %cst_31 [0] : vector<4x8x32xf32> to vector<8x32xf32>
    %c0_32 = arith.constant 0 : index
    %c0_33 = arith.constant 0 : index
    %77 = vector.load %arg7[%c0_32, %c0_33] : memref<1x32xf32, #tpu.memory_space<vmem>>, vector<1x32xf32>
    %78 = vector.shape_cast %77 : vector<1x32xf32> to vector<32xf32>
    %79 = vector.shape_cast %78 : vector<32xf32> to vector<1x32xf32>
    %80 = vector.broadcast %79 : vector<1x32xf32> to vector<8x32xf32>
    %81 = arith.addf %76, %80 : vector<8x32xf32>
    %82 = arith.addf %81, %1 : vector<8x32xf32>
    %c0_34 = arith.constant 0 : index
    %c0_35 = arith.constant 0 : index
    %83 = vector.load %arg9[%c0_34, %c0_35] : memref<1x32xf32, #tpu.memory_space<vmem>>, vector<1x32xf32>
    %84 = vector.shape_cast %83 : vector<1x32xf32> to vector<32xf32>
    %c0_36 = arith.constant 0 : index
    %c0_37 = arith.constant 0 : index
    %85 = vector.load %arg10[%c0_36, %c0_37] : memref<1x32xf32, #tpu.memory_space<vmem>>, vector<1x32xf32>
    %86 = vector.shape_cast %85 : vector<1x32xf32> to vector<32xf32>
    %cst_38 = arith.constant dense<0.000000e+00> : vector<8xf32>
    %87 = vector.multi_reduction <add>, %82, %cst_38 [1] : vector<8x32xf32> to vector<8xf32>
    %88 = vector.shape_cast %87 : vector<8xf32> to vector<8x1xf32>
    %cst_39 = arith.constant 3.200000e+01 : f32
    %89 = vector.broadcast %cst_39 : f32 to vector<8x1xf32>
    %90 = arith.divf %88, %89 : vector<8x1xf32>
    %91 = vector.broadcast %90 : vector<8x1xf32> to vector<8x32xf32>
    %92 = arith.subf %82, %91 : vector<8x32xf32>
    %93 = arith.mulf %92, %92 : vector<8x32xf32>
    %cst_40 = arith.constant dense<0.000000e+00> : vector<8xf32>
    %94 = vector.multi_reduction <add>, %93, %cst_40 [1] : vector<8x32xf32> to vector<8xf32>
    %95 = vector.shape_cast %94 : vector<8xf32> to vector<8x1xf32>
    %cst_41 = arith.constant 3.200000e+01 : f32
    %96 = vector.broadcast %cst_41 : f32 to vector<8x1xf32>
    %97 = arith.divf %95, %96 : vector<8x1xf32>
    %98 = vector.broadcast %90 : vector<8x1xf32> to vector<8x32xf32>
    %99 = arith.subf %82, %98 : vector<8x32xf32>
    %cst_42 = arith.constant 9.99999974E-6 : f32
    %100 = vector.broadcast %cst_42 : f32 to vector<8x1xf32>
    %101 = arith.addf %97, %100 : vector<8x1xf32>
    %102 = math.rsqrt %101 : vector<8x1xf32>
    %103 = vector.broadcast %102 : vector<8x1xf32> to vector<8x32xf32>
    %104 = arith.mulf %99, %103 : vector<8x32xf32>
    %105 = vector.shape_cast %84 : vector<32xf32> to vector<1x32xf32>
    %106 = vector.broadcast %105 : vector<1x32xf32> to vector<8x32xf32>
    %107 = arith.mulf %104, %106 : vector<8x32xf32>
    %108 = vector.shape_cast %86 : vector<32xf32> to vector<1x32xf32>
    %109 = vector.broadcast %108 : vector<1x32xf32> to vector<8x32xf32>
    %110 = arith.addf %107, %109 : vector<8x32xf32>
    %111 = arith.truncf %110 : vector<8x32xf32> to vector<8x32xbf16>
    %c0_43 = arith.constant 0 : index
    %c0_44 = arith.constant 0 : index
    %112 = vector.load %arg11[%c0_43, %c0_44] : memref<32x128xbf16, #tpu.memory_space<vmem>>, vector<32x128xbf16>
    %cst_45 = arith.constant dense<0.000000e+00> : vector<8x128xf32>
    %113 = tpu.matmul %111, %112, %cst_45 {dimension_numbers = #tpu.dot_dimension_numbers<[1], [0], [0], [1], [0, 0, 1, 1], [], []>} : vector<8x32xbf16>, vector<32x128xbf16>, vector<8x128xf32> -> vector<8x128xf32>
    %c0_46 = arith.constant 0 : index
    %c0_47 = arith.constant 0 : index
    %114 = vector.load %arg12[%c0_46, %c0_47] : memref<1x128xf32, #tpu.memory_space<vmem>>, vector<1x128xf32>
    %115 = vector.shape_cast %114 : vector<1x128xf32> to vector<128xf32>
    %116 = vector.shape_cast %115 : vector<128xf32> to vector<1x128xf32>
    %117 = vector.broadcast %116 : vector<1x128xf32> to vector<8x128xf32>
    %118 = arith.addf %113, %117 : vector<8x128xf32>
    %c0_48 = arith.constant 0 : index
    %c0_49 = arith.constant 0 : index
    %119 = vector.load %arg13[%c0_48, %c0_49] : memref<32x128xbf16, #tpu.memory_space<vmem>>, vector<32x128xbf16>
    %cst_50 = arith.constant dense<0.000000e+00> : vector<8x128xf32>
    %120 = tpu.matmul %111, %119, %cst_50 {dimension_numbers = #tpu.dot_dimension_numbers<[1], [0], [0], [1], [0, 0, 1, 1], [], []>} : vector<8x32xbf16>, vector<32x128xbf16>, vector<8x128xf32> -> vector<8x128xf32>
    %c0_51 = arith.constant 0 : index
    %c0_52 = arith.constant 0 : index
    %121 = vector.load %arg14[%c0_51, %c0_52] : memref<1x128xf32, #tpu.memory_space<vmem>>, vector<1x128xf32>
    %122 = vector.shape_cast %121 : vector<1x128xf32> to vector<128xf32>
    %123 = vector.shape_cast %122 : vector<128xf32> to vector<1x128xf32>
    %124 = vector.broadcast %123 : vector<1x128xf32> to vector<8x128xf32>
    %125 = arith.addf %120, %124 : vector<8x128xf32>
    %cst_53 = arith.constant 5.000000e-01 : f32
    %126 = vector.broadcast %cst_53 : f32 to vector<8x128xf32>
    %127 = arith.mulf %126, %125 : vector<8x128xf32>
    %cst_54 = arith.constant 0.707106769 : f32
    %128 = vector.broadcast %cst_54 : f32 to vector<8x128xf32>
    %129 = arith.mulf %125, %128 : vector<8x128xf32>
    %130 = math.erf %129 : vector<8x128xf32>
    %cst_55 = arith.constant 1.000000e+00 : f32
    %131 = vector.broadcast %cst_55 : f32 to vector<8x128xf32>
    %132 = arith.addf %131, %130 : vector<8x128xf32>
    %133 = arith.mulf %127, %132 : vector<8x128xf32>
    %134 = arith.mulf %118, %133 : vector<8x128xf32>
    %135 = arith.truncf %134 : vector<8x128xf32> to vector<8x128xbf16>
    %c0_56 = arith.constant 0 : index
    %c0_57 = arith.constant 0 : index
    %136 = vector.load %arg15[%c0_56, %c0_57] : memref<128x32xbf16, #tpu.memory_space<vmem>>, vector<128x32xbf16>
    %cst_58 = arith.constant dense<0.000000e+00> : vector<8x32xf32>
    %137 = tpu.matmul %135, %136, %cst_58 {dimension_numbers = #tpu.dot_dimension_numbers<[1], [0], [0], [1], [0, 0, 1, 1], [], []>} : vector<8x128xbf16>, vector<128x32xbf16>, vector<8x32xf32> -> vector<8x32xf32>
    %c0_59 = arith.constant 0 : index
    %c0_60 = arith.constant 0 : index
    %138 = vector.load %arg16[%c0_59, %c0_60] : memref<1x32xf32, #tpu.memory_space<vmem>>, vector<1x32xf32>
    %139 = vector.shape_cast %138 : vector<1x32xf32> to vector<32xf32>
    %140 = vector.shape_cast %139 : vector<32xf32> to vector<1x32xf32>
    %141 = vector.broadcast %140 : vector<1x32xf32> to vector<8x32xf32>
    %142 = arith.addf %137, %141 : vector<8x32xf32>
    %143 = arith.addf %142, %82 : vector<8x32xf32>
    %c0_61 = arith.constant 0 : index
    %c0_62 = arith.constant 0 : index
    %c0_63 = arith.constant 0 : index
    %144 = vector.load %arg17[%c0_61, %c0_62, %c0_63] : memref<1x8x32xf32, #tpu.memory_space<vmem>>, vector<1x8x32xf32>
    %145 = vector.shape_cast %144 : vector<1x8x32xf32> to vector<8x32xf32>
    %146 = vector.shape_cast %143 : vector<8x32xf32> to vector<1x8x32xf32>
    tpu.vector_store %arg17[%c0_61, %c0_62, %c0_63], %146 {strides = array<i32>} : memref<1x8x32xf32, #tpu.memory_space<vmem>>, vector<1x8x32xf32>,
    return
  }
  func.func @transform_0(%arg0: i32) -> (i32, i32, i32) {
    %c0_i32 = arith.constant 0 : i32
    %c0_i32_0 = arith.constant 0 : i32
    %c0_i32_1 = arith.constant 0 : i32
    return %arg0, %c0_i32, %c0_i32_0 : i32, i32, i32
  }
  func.func @transform_1(%arg0: i32) -> (i32, i32) {
    %c0_i32 = arith.constant 0 : i32
    %c0_i32_0 = arith.constant 0 : i32
    %c0_i32_1 = arith.constant 0 : i32
    return %c0_i32, %c0_i32_0 : i32, i32
  }
  func.func @transform_2(%arg0: i32) -> (i32, i32) {
    %c0_i32 = arith.constant 0 : i32
    %c0_i32_0 = arith.constant 0 : i32
    %c0_i32_1 = arith.constant 0 : i32
    return %c0_i32, %c0_i32_0 : i32, i32
  }
  func.func @transform_3(%arg0: i32) -> (i32, i32, i32) {
    %c0_i32 = arith.constant 0 : i32
    %c0_i32_0 = arith.constant 0 : i32
    %c0_i32_1 = arith.constant 0 : i32
    %c0_i32_2 = arith.constant 0 : i32
    return %c0_i32, %c0_i32_0, %c0_i32_1 : i32, i32, i32
  }
  func.func @transform_4(%arg0: i32) -> (i32, i32) {
    %c0_i32 = arith.constant 0 : i32
    %c0_i32_0 = arith.constant 0 : i32
    %c0_i32_1 = arith.constant 0 : i32
    return %c0_i32, %c0_i32_0 : i32, i32
  }
  func.func @transform_5(%arg0: i32) -> (i32, i32, i32) {
    %c0_i32 = arith.constant 0 : i32
    %c0_i32_0 = arith.constant 0 : i32
    %c0_i32_1 = arith.constant 0 : i32
    %c0_i32_2 = arith.constant 0 : i32
    return %c0_i32, %c0_i32_0, %c0_i32_1 : i32, i32, i32
  }
  func.func @transform_6(%arg0: i32) -> (i32, i32) {
    %c0_i32 = arith.constant 0 : i32
    %c0_i32_0 = arith.constant 0 : i32
    %c0_i32_1 = arith.constant 0 : i32
    return %c0_i32, %c0_i32_0 : i32, i32
  }
  func.func @transform_7(%arg0: i32) -> (i32, i32, i32) {
    %c0_i32 = arith.constant 0 : i32
    %c0_i32_0 = arith.constant 0 : i32
    %c0_i32_1 = arith.constant 0 : i32
    %c0_i32_2 = arith.constant 0 : i32
    return %c0_i32, %c0_i32_0, %c0_i32_1 : i32, i32, i32
  }
  func.func @transform_8(%arg0: i32) -> (i32, i32) {
    %c0_i32 = arith.constant 0 : i32
    %c0_i32_0 = arith.constant 0 : i32
    %c0_i32_1 = arith.constant 0 : i32
    return %c0_i32, %c0_i32_0 : i32, i32
  }
  func.func @transform_9(%arg0: i32) -> (i32, i32) {
    %c0_i32 = arith.constant 0 : i32
    %c0_i32_0 = arith.constant 0 : i32
    %c0_i32_1 = arith.constant 0 : i32
    return %c0_i32, %c0_i32_0 : i32, i32
  }
  func.func @transform_10(%arg0: i32) -> (i32, i32) {
    %c0_i32 = arith.constant 0 : i32
    %c0_i32_0 = arith.constant 0 : i32
    %c0_i32_1 = arith.constant 0 : i32
    return %c0_i32, %c0_i32_0 : i32, i32
  }
  func.func @transform_11(%arg0: i32) -> (i32, i32) {
    %c0_i32 = arith.constant 0 : i32
    %c0_i32_0 = arith.constant 0 : i32
    %c0_i32_1 = arith.constant 0 : i32
    return %c0_i32, %c0_i32_0 : i32, i32
  }
  func.func @transform_12(%arg0: i32) -> (i32, i32) {
    %c0_i32 = arith.constant 0 : i32
    %c0_i32_0 = arith.constant 0 : i32
    %c0_i32_1 = arith.constant 0 : i32
    return %c0_i32, %c0_i32_0 : i32, i32
  }
  func.func @transform_13(%arg0: i32) -> (i32, i32) {
    %c0_i32 = arith.constant 0 : i32
    %c0_i32_0 = arith.constant 0 : i32
    %c0_i32_1 = arith.constant 0 : i32
    return %c0_i32, %c0_i32_0 : i32, i32
  }
  func.func @transform_14(%arg0: i32) -> (i32, i32) {
    %c0_i32 = arith.constant 0 : i32
    %c0_i32_0 = arith.constant 0 : i32
    %c0_i32_1 = arith.constant 0 : i32
    return %c0_i32, %c0_i32_0 : i32, i32
  }
  func.func @transform_15(%arg0: i32) -> (i32, i32) {
    %c0_i32 = arith.constant 0 : i32
    %c0_i32_0 = arith.constant 0 : i32
    %c0_i32_1 = arith.constant 0 : i32
    return %c0_i32, %c0_i32_0 : i32, i32
  }
  func.func @transform_16(%arg0: i32) -> (i32, i32, i32) {
    %c0_i32 = arith.constant 0 : i32
    %c0_i32_0 = arith.constant 0 : i32
    %c0_i32_1 = arith.constant 0 : i32
    return %arg0, %c0_i32, %c0_i32_0 : i32, i32, i32
  }
}

</mosaic_0001>

<bundles_post_ra>
// kernel: transformer_forward.2
= control target key start
LH: loop header
LB: loop body
LE: loop exit
PB: predicated region body
PF: predicated region fallthrough
CT: control target
= control target key end

     0   :  { %s2241_s21 = smov 0   ;;  %s2508_s0 = inlined_call_operand.vmem [shape: f32[2,8,32], index: 0, kind: input, shape index: {}, may-alias: {0,16}]   ;;  %s2509_s1 = inlined_call_operand.vmem [shape: f32[1,32], index: 1, kind: input, shape index: {}]   ;;  %s2510_s2 = inlined_call_operand.vmem [shape: f32[1,32], index: 2, kind: input, shape index: {}]   ;;  %s2511_s3 = inlined_call_operand.vmem [shape: bf16[4,32,16], index: 3, kind: input, shape index: {}]   ;;  %s2512_s4 = inlined_call_operand.vmem [shape: bf16[32,32], index: 4, kind: input, shape index: {}]   ;;  %s2513_s5 = inlined_call_operand.vmem [shape: bf16[4,16,32], index: 5, kind: input, shape index: {}]   ;;  %s2514_s6 = inlined_call_operand.vmem [shape: f32[1,32], index: 6, kind: input, shape index: {}]   ;;  %s2515_s7 = inlined_call_operand.vmem [shape: f32[4,8,8], index: 7, kind: input, shape index: {}]   ;;  %s2516_s8 = inlined_call_operand.vmem [shape: f32[1,32], index: 8, kind: input, shape index: {}]   ;;  %s2517_s9 = inlined_call_operand.vmem [shape: f32[1,32], index: 9, kind: input, shape index: {}]   ;;  %s2518_s10 = inlined_call_operand.vmem [shape: bf16[32,128], index: 10, kind: input, shape index: {}]   ;;  %s2519_s11 = inlined_call_operand.vmem [shape: f32[1,128], index: 11, kind: input, shape index: {}]   ;;  %s2520_s12 = inlined_call_operand.vmem [shape: bf16[32,128], index: 12, kind: input, shape index: {}]   ;;  %s2521_s13 = inlined_call_operand.vmem [shape: f32[1,128], index: 13, kind: input, shape index: {}]   ;;  %s2522_s14 = inlined_call_operand.vmem [shape: bf16[128,32], index: 14, kind: input, shape index: {}]   ;;  %s2523_s15 = inlined_call_operand.vmem [shape: f32[1,32], index: 15, kind: input, shape index: {}]   ;;  %s2524_s16 = inlined_call_operand.vmem [shape: f32[2,8,32], index: 16, kind: output, shape index: {}, may-alias: {0,16}]  }
   0x1   :  { %2525 = sst [smem:[#allocation2_spill]] %s2508_s0 }
   0x2 LB: > { %s1822_s22 = sadd.s32 4294967295, %s2151_s21   ;;  %p1826_p0 = scmp.ge.s32.totalorder %s2151_s21, 1  ;;  %s2151_s21 = sphi %s2241_s21, %s26_s21  }
   0x3   : > { %p461_p1 = scmp.lt.s32.totalorder %s2151_s21, 3 }
   0x5   : > { %p462_p2 = pnand %p1826_p0, %p461_p1 }
   0x6   : > { %p509_p3 = scmp.lt.s32.totalorder (!%p462_p2), %s1822_s22, 1  ;;  %s2526_s26 = sld [smem:[#allocation2_spill]] (!%p462_p2) }
   0x7   : > { %465 = sbr.rel (%p462_p2) target bundleno = 2181 (0x885), region = 84  ;;  %s2155_s24 = smov (!%p462_p2), 112  }
   0xc   : > { %s2528_s22 = smov (!%p509_p3, %s1822_s22), 1  ;;  %vm521_vm0 = vcmask 261120   ;;  %v2097_v7 = vld [vmem:[%s2512_s4 + $0x8] sm:$0xff]   ;;  %v2153_v9 = vmov 0.0   ;;  %v2099_v10 = vld [vmem:[%s2512_s4] sm:$0xff]   ;;  %vm2154_vm1 = vmmov 0   ;;  %v1027_v58 = vlaneseq }
   0xd   : > { %s1827_s23 = sshll.u32 %s2528_s22, 3  ;;  %v2098_v8 = vld [vmem:[%s2511_s3 + $0x28] sm:$0xff]   ;;  %1938 = vmatprep.subr.bf16.mxu0 %v2153_v9  ;;  %1962 = vmatprep.subr.bf16.mxu1 %v2153_v9  ;;  %v2100_v11 = vld [vmem:[%s2511_s3 + $0x20] sm:$0xff]   ;;  %v2103_v24 = vld [vmem:[%s2511_s3 + $0x18] sm:$0xff]   ;;  %vm851_vm2 = vcmask 130048   ;;  %vm1038_vm4 = vcmask 64512  }
   0xe   : > { %s512_s27 = scalar_lea.vmem %s2526_s26, %s1827_s23  ;;  %1939 = vmatpush3.bf16.msra.mxu0 %v2097_v7  ;;  %1963 = vmatpush3.bf16.msra.mxu1 %v2098_v8  ;;  %v1829_v16 = vld [vmem:[%s2509_s1] ss:$0 sm:$0xff]  ;;  %v2101_v21 = vld [vmem:[%s2511_s3 + $0x8] sm:$0xff]   ;;  %v2104_v25 = vld [vmem:[%s2511_s3 + $0x10] sm:$0xff]   ;;  %v1028_v60 = vshrl.u32 %v1027_v58, 7  ;;  %v1030_v61 = vand.u32 127, %v1027_v58  ;;  %s516_s20 = scalar_lea.vmem %s2524_s16, %s1827_s23 }
   0xf   : > { %v2257_v0 = vld [vmem:[%s512_s27] sm:$0xff]  ;;  %1940 = vmatprep.subr.bf16.mxu0 %v2153_v9  ;;  %1964 = vmatprep.subr.bf16.mxu1 %v2153_v9  ;;  %v2105_v26 = vld [vmem:[%s2511_s3 + $0x38] sm:$0xff]   ;;  %v2106_v27 = vld [vmem:[%s2511_s3 + $0x30] sm:$0xff]   ;;  %vm1093_vm5 = vcmask 1043456  }
  0x10   : > { %v522_v1 = vsel %vm521_vm0, %v2257_v0, 0.0  ;;  %1942 = vmatprep.mubr.msk.bf16.mxu0 %vm2154_vm1, %v2153_v9  ;;  %1966 = vmatprep.mubr.msk.bf16.mxu1 %vm2154_vm1, %v2153_v9  ;;  %v1830_v18 = vld [vmem:[%s2510_s2] ss:$0 sm:$0xff]  ;;  %vm1031_vm3 = vcmp.gt.s32.totalorder %v1030_v61, %v1028_v60 }
  0x11   : > { %523 = vadd.xlane.f32.xlu0 %v522_v1  ;;  %v2102_v23 = vld [vmem:[%s2511_s3] sm:$0xff]  }
  0x12   : > { %1941 = vmatpush3.bf16.msra.mxu0 %v2099_v10  ;;  %1965 = vmatpush3.bf16.msra.mxu1 %v2100_v11  ;;  %v843_v59 = vld [vmem:[%s2515_s7] sm:$0xff] }
  0x13   : > { %1946 = vmatprep.subr.bf16.mxu0 %v2153_v9  ;;  %1978 = vmatprep.subr.bf16.mxu1 %v2153_v9  ;;  %v847_v62 = vmul.f32 4.0, %v843_v59 }
  0x9a   : > { %v524_v2 = vpop.xlane.xlu0 %523 }
  0x9b   : > { %v526_v3 = vmul.f32 0.03125, %v524_v2 }
  0x9d   : > { %v527_v4 = vsub.f32 %v2257_v0, %v526_v3  ;;  %v844_v3 = vld [vmem:[%s2515_s7 + $0x8] sm:$0xff] }
  0x9e   : > { %v848_v8 = vmul.f32 4.0, %v844_v3 }
  0x9f   : > { %v528_v5 = vmul.f32 %v527_v4, %v527_v4 }
  0xa1   : > { %v529_v6 = vsel %vm521_vm0, %v528_v5, 0.0 }
  0xa2   : > { %530 = vadd.xlane.f32.xlu0 %v529_v6 }
 0x12b   : > { %v531_v12 = vpop.xlane.xlu0 %530 }
 0x12c   : > { %v532_v13 = vmul.f32 0.03125, %v531_v12 }
 0x12e   : > { %v533_v14 = vadd.f32 1e-05, %v532_v13 }
 0x130   : > { %2123 = vrsqrt.f32 %v533_v14 }
 0x13d   : > { %v2124_v15 = vpop.eup %2123 }
 0x13e   : > { %v535_v17 = vmul.f32 %v2124_v15, %v527_v4  ;;  %v845_v4 = vld [vmem:[%s2515_s7 + $0x10] sm:$0xff] }
 0x13f   : > { %v849_v10 = vmul.f32 4.0, %v845_v4 }
 0x140   : > { %v542_v19 = vmul.f32 %v1829_v16, %v535_v17 }
 0x142   : > { %v549_v20 = vadd.f32 %v1830_v18, %v542_v19  ;;  %v846_v18 = vld [vmem:[%s2515_s7 + $0x18] sm:$0xff] }
 0x144   : > { %v550_v22 = vpack.c.bf16 %v549_v20, %v549_v20 }
 0x146   : > { %1943 = vmatmul.mubr.msk.bf16.vlgmr.msra.gmra.mxu0 %vm521_vm0, %v550_v22  ;;  %1967 = vmatmul.mubr.msk.bf16.vlgmr.msra.gmra.mxu1 %vm521_vm0, %v550_v22 }
 0x147   : > { %1947 = vmatpush3.bf16.msra.mxu0 %v2101_v21  ;;  %1950 = vmatprep.mubr.msk.bf16.mxu0 %vm2154_vm1, %v2153_v9 }
 0x148   : > { %1948 = vmatprep.subr.bf16.mxu0 %v2153_v9  ;;  %1980 = vmatprep.mubr.msk.bf16.mxu1 %vm2154_vm1, %v2153_v9 }
 0x14b   : > { %1949 = vmatpush3.bf16.msra.mxu0 %v2102_v23 }
 0x14c   : > { %1954 = vmatprep.subr.bf16.mxu0 %v2153_v9 }
 0x14e   : > { %1951 = vmatmul.mubr.msk.bf16.vlgmr.msra.gmra.mxu0 %vm521_vm0, %v550_v22 }
 0x14f   : > { %1955 = vmatpush3.bf16.msra.mxu0 %v2103_v24  ;;  %1958 = vmatprep.mubr.msk.bf16.mxu0 %vm2154_vm1, %v2153_v9 }
 0x150   : > { %1956 = vmatprep.subr.bf16.mxu0 %v2153_v9 }
 0x153   : > { %1957 = vmatpush3.bf16.msra.mxu0 %v2104_v25  ;;  %v850_v25 = vmul.f32 4.0, %v846_v18 }
 0x154   : > { %1970 = vmatprep.subr.bf16.mxu0 %v2153_v9 }
 0x156   : > { %1959 = vmatmul.mubr.msk.bf16.vlgmr.msra.gmra.mxu0 %vm521_vm0, %v550_v22 }
 0x157   : > { %1971 = vmatpush3.bf16.msra.mxu0 %v2105_v26  ;;  %1974 = vmatprep.mubr.msk.bf16.mxu0 %vm2154_vm1, %v2153_v9 }
 0x158   : > { %1972 = vmatprep.subr.bf16.mxu0 %v2153_v9 }
 0x15b   : > { %1973 = vmatpush3.bf16.msra.mxu0 %v2106_v27 }
 0x15c   : > { %1984 = vmatprep.subr.bf16.mxu0 %v2153_v9 }
 0x15e   : > { %1975 = vmatmul.mubr.msk.bf16.vlgmr.msra.gmra.mxu0 %vm521_vm0, %v550_v22 }
 0x15f   : > { %1986 = vmatprep.mubr.msk.bf16.mxu0 %vm2154_vm1, %v2153_v9 }
 0x206   : > { %v604_v28 = vpop.f32.mrf.mxu0  ;;  %v777_v29 = vpop.f32.mrf.mxu1 }
 0x207   : > { %v2330_v30 = vpack.c.bf16 %v604_v28, %v604_v28  ;;  %v837_v44 = vmul.f32 0.25, %v777_v29 }
 0x208   : > { %v1944_v31 = vpop.f32.mrf.mxu0  ;;  %v1968_v32 = vpop.f32.mrf.mxu1 }
 0x209   : > { %v856_v33 = vsel %vm851_vm2, %v2330_v30, 0  ;;  %v841_v48 = vpack.c.bf16 %v837_v44, %v837_v44 }
 0x20a   : > { %v607_v34 = vpop.f32.mrf.mxu0  ;;  %v780_v35 = vpop.f32.mrf.mxu1  ;;  %1979 = vmatpush3.bf16.xpose.msra.mxu1 %v856_v33  ;;  %1985 = vmatpush3.bf16.xpose.msra.mxu0 %v856_v33 }
 0x20b   : > { %1990 = vmatprep.subr.bf16.mxu1 %v2153_v9  ;;  %1996 = vmatprep.subr.bf16.mxu0 %v2153_v9 }
 0x20c   : > { %v1945_v36 = vpop.f32.mrf.mxu0  ;;  %v1969_v37 = vpop.f32.mrf.mxu1 }
 0x20e   : > { %v673_v38 = vpop.f32.mrf.mxu0 }
 0x20f   : > { %v835_v39 = vmul.f32 0.25, %v673_v38 }
 0x210   : > { %v1952_v40 = vpop.f32.mrf.mxu0 }
 0x211   : > { %v839_v41 = vpack.c.bf16 %v835_v39, %v835_v39 }
 0x212   : > { %v676_v42 = vpop.f32.mrf.mxu0 }
 0x213   : > { %1981 = vmatmul.mubr.msk.bf16.vlgmr.msra.gmra.mxu1 %vm851_vm2, %v839_v41 }
 0x214   : > { %1991 = vmatpush3.bf16.xpose.msra.mxu1 %v856_v33  ;;  %v1953_v43 = vpop.f32.mrf.mxu0  ;;  %1992 = vmatprep.mubr.msk.bf16.mxu1 %vm2154_vm1, %v2153_v9 }
 0x215   : > { %2002 = vmatprep.subr.bf16.mxu1 %v2153_v9 }
 0x216   : > { %v725_v45 = vpop.f32.mrf.mxu0 }
 0x217   : > { %v836_v46 = vmul.f32 0.25, %v725_v45 }
 0x218   : > { %v1960_v47 = vpop.f32.mrf.mxu0 }
 0x219   : > { %v840_v49 = vpack.c.bf16 %v836_v46, %v836_v46 }
 0x21a   : > { %v728_v50 = vpop.f32.mrf.mxu0 }
 0x21b   : > { %1987 = vmatmul.mubr.msk.bf16.vlgmr.msra.gmra.mxu0 %vm851_vm2, %v840_v49  ;;  %1993 = vmatmul.mubr.msk.bf16.vlgmr.msra.gmra.mxu1 %vm851_vm2, %v841_v48 }
 0x21c   : > { %1997 = vmatpush3.bf16.xpose.msra.mxu0 %v856_v33  ;;  %v1961_v51 = vpop.f32.mrf.mxu0  ;;  %1998 = vmatprep.mubr.msk.bf16.mxu0 %vm2154_vm1, %v2153_v9 }
 0x21d   : > { %2008 = vmatprep.subr.bf16.mxu0 %v2153_v9  ;;  %2004 = vmatprep.mubr.msk.bf16.mxu1 %vm2154_vm1, %v2153_v9 }
 0x21e   : > { %v829_v52 = vpop.f32.mrf.mxu0 }
 0x21f   : > { %v838_v53 = vmul.f32 0.25, %v829_v52 }
 0x220   : > { %v1976_v54 = vpop.f32.mrf.mxu0 }
 0x221   : > { %v842_v55 = vpack.c.bf16 %v838_v53, %v838_v53 }
 0x222   : > { %v832_v56 = vpop.f32.mrf.mxu0 }
 0x223   : > { %1999 = vmatmul.mubr.msk.bf16.vlgmr.msra.gmra.mxu0 %vm851_vm2, %v842_v55 }
 0x224   : > { %v1977_v57 = vpop.f32.mrf.mxu0  ;;  %2010 = vmatprep.mubr.msk.bf16.mxu0 %vm2154_vm1, %v2153_v9 }
 0x2d3   : > { %v892_v63 = vpop.f32.mrf.mxu1 }
 0x2d4   : > { %v893_v1 = vadd.f32 %v892_v63, %v847_v62 }
 0x2d5   : > { %v1982_v2 = vpop.f32.mrf.mxu1 }
 0x2d6   : > { %v1034_v5 = vsel %vm1031_vm3, -3.4028235e+38, %v893_v1 }
 0x2d7   : > { %v895_v6 = vpop.f32.mrf.mxu1  ;;  %v1039_v7 = vsel %vm1038_vm4, %v1034_v5, -inf }
 0x2d8   : > { %1040 = vmax.xlane.f32.xlu1 %v1039_v7 }
 0x2d9   : > { %v1983_v11 = vpop.f32.mrf.mxu1 }
 0x2da   : > { %v2107_v11 = vld [vmem:[%s2513_s5] sm:$0xff]  }
 0x2db   : > { %v935_v12 = vpop.f32.mrf.mxu0  ;;  %v978_v13 = vpop.f32.mrf.mxu1 }
 0x2dc   : > { %v936_v14 = vadd.f32 %v935_v12, %v848_v8  ;;  %v979_v15 = vadd.f32 %v978_v13, %v849_v10  ;;  %v2108_v12 = vld [vmem:[%s2513_s5 + $0x8] sm:$0xff]  }
 0x2dd   : > { %v1988_v16 = vpop.f32.mrf.mxu0  ;;  %v1994_v17 = vpop.f32.mrf.mxu1 }
 0x2de   : > { %v1036_v19 = vsel %vm1031_vm3, -3.4028235e+38, %v979_v15  ;;  %v1035_v20 = vsel %vm1031_vm3, -3.4028235e+38, %v936_v14  ;;  %v2109_v14 = vld [vmem:[%s2513_s5 + $0x10] sm:$0xff]  }
 0x2df   : > { %v938_v21 = vpop.f32.mrf.mxu0  ;;  %v981_v22 = vpop.f32.mrf.mxu1  ;;  %v1045_v23 = vsel %vm1038_vm4, %v1036_v19, -inf  ;;  %v1042_v24 = vsel %vm1038_vm4, %v1035_v20, -inf }
 0x2e0   : > { %1046 = vmax.xlane.f32.xlu0 %v1045_v23  ;;  %1043 = vmax.xlane.f32.xlu1 %v1042_v24  ;;  %v2110_v22 = vld [vmem:[%s2513_s5 + $0x18] sm:$0xff]  }
 0x2e1   : > { %v1989_v26 = vpop.f32.mrf.mxu0  ;;  %v1995_v27 = vpop.f32.mrf.mxu1 }
 0x2e3   : > { %v1021_v28 = vpop.f32.mrf.mxu0 }
 0x2e4   : > { %v1022_v29 = vadd.f32 %v1021_v28, %v850_v25 }
 0x2e5   : > { %v2000_v31 = vpop.f32.mrf.mxu0 }
 0x2e6   : > { %v1037_v32 = vsel %vm1031_vm3, -3.4028235e+38, %v1022_v29 }
 0x2e7   : > { %v1024_v33 = vpop.f32.mrf.mxu0  ;;  %v1048_v34 = vsel %vm1038_vm4, %v1037_v32, -inf }
 0x2e8   : > { %1049 = vmax.xlane.f32.xlu1 %v1048_v34 }
 0x2e9   : > { %v2001_v35 = vpop.f32.mrf.mxu0 }
 0x361   : > { %v1041_v36 = vpop.xlane.xlu1 %1040 }
 0x362   : > { %v1051_v37 = vsub.f32 %v1034_v5, %v1041_v36 }
 0x364   : > { %v1055_v38 = vmul.f32 1.442695, %v1051_v37 }
 0x366   : > { %2125 = vpow2.f32 %v1055_v38 }
 0x369   : > { %v1047_v39 = vpop.xlane.xlu0 %1046  ;;  %v1044_v40 = vpop.xlane.xlu1 %1043 }
 0x36a   : > { %v1053_v41 = vsub.f32 %v1036_v19, %v1047_v39  ;;  %v1052_v42 = vsub.f32 %v1035_v20, %v1044_v40 }
 0x36c   : > { %v1059_v43 = vmul.f32 1.442695, %v1053_v41  ;;  %v1057_v44 = vmul.f32 1.442695, %v1052_v42 }
 0x36e   : > { %2127 = vpow2.f32 %v1059_v43 }
 0x36f   : > { %2129 = vpow2.f32 %v1057_v44 }
 0x371   : > { %v1050_v45 = vpop.xlane.xlu1 %1049 }
 0x372   : > { %v1054_v46 = vsub.f32 %v1037_v32, %v1050_v45 }
 0x373   : > { %v2126_v47 = vpop.eup %2125 }
 0x374   : > { %v1061_v48 = vmul.f32 1.442695, %v1054_v46  ;;  %v1063_v49 = vsel %vm1038_vm4, %v2126_v47, 0.0 }
 0x375   : > { %1064 = vadd.xlane.f32.xlu0 %v1063_v49 }
 0x376   : > { %2131 = vpow2.f32 %v1061_v48 }
 0x37b   : > { %v2128_v50 = vpop.eup %2127 }
 0x37c   : > { %v2130_v51 = vpop.eup %2129  ;;  %v1069_v52 = vsel %vm1038_vm4, %v2128_v50, 0.0 }
 0x37d   : > { %1070 = vadd.xlane.f32.xlu0 %v1069_v52  ;;  %v1066_v53 = vsel %vm1038_vm4, %v2130_v51, 0.0 }
 0x37e   : > { %1067 = vadd.xlane.f32.xlu1 %v1066_v53 }
 0x383   : > { %v2132_v54 = vpop.eup %2131 }
 0x384   : > { %v1072_v55 = vsel %vm1038_vm4, %v2132_v54, 0.0 }
 0x385   : > { %1073 = vadd.xlane.f32.xlu1 %v1072_v55  ;;  %v1862_v55 = vld [vmem:[%s2514_s6] ss:$0 sm:$0xff] }
 0x393   : > { %1088 = vrot.lane.b32.xlu0 %v2330_v30, %s2155_s24 }
 0x3fe   : > { %v1065_v56 = vpop.xlane.xlu0 %1064 }
 0x3ff   : > { %2133 = vrcp.f32 %v1065_v56 }
 0x406   : > { %v1071_v57 = vpop.xlane.xlu0 %1070 }
 0x407   : > { %2135 = vrcp.f32 %v1071_v57  ;;  %v1068_v58 = vpop.xlane.xlu1 %1067 }
 0x408   : > { %2137 = vrcp.f32 %v1068_v58 }
 0x40a   : > { %v1089_v59 = vpop.permute.xlu0 %1088 }
 0x40b   : > { %v1095_v60 = vsel %vm1093_vm5, %v1089_v59, 0 }
 0x40c   : > { %v2134_v61 = vpop.eup %2133  ;;  %2003 = vmatpush3.bf16.msra.mxu1 %v1095_v60  ;;  %2009 = vmatpush3.bf16.msra.mxu0 %v1095_v60 }
 0x40d   : > { %2014 = vmatprep.subr.bf16.mxu1 %v2153_v9  ;;  %v1079_v62 = vmul.f32 %v2134_v61, %v2126_v47  ;;  %2020 = vmatprep.subr.bf16.mxu0 %v2153_v9 }
 0x40e   : > { %v1074_v63 = vpop.xlane.xlu1 %1073 }
 0x40f   : > { %2139 = vrcp.f32 %v1074_v63  ;;  %v1083_v30 = vpack.c.bf16 %v1079_v62, %v1079_v62 }
 0x411   : > { %2005 = vmatmul.mubr.msk.bf16.vlgmr.msra.gmra.mxu1 %vm1038_vm4, %v1083_v30 }
 0x412   : > { %2015 = vmatpush3.bf16.msra.mxu1 %v1095_v60  ;;  %2016 = vmatprep.mubr.msk.bf16.mxu1 %vm2154_vm1, %v2153_v9 }
 0x413   : > { %2026 = vmatprep.subr.bf16.mxu1 %v2153_v9 }
 0x414   : > { %v2136_v1 = vpop.eup %2135 }
 0x415   : > { %v2138_v2 = vpop.eup %2137  ;;  %v1081_v3 = vmul.f32 %v2136_v1, %v2128_v50 }
 0x416   : > { %v1080_v4 = vmul.f32 %v2138_v2, %v2130_v51 }
 0x417   : > { %v1085_v5 = vpack.c.bf16 %v1081_v3, %v1081_v3 }
 0x418   : > { %v1084_v6 = vpack.c.bf16 %v1080_v4, %v1080_v4  ;;  %v2111_v4 = vld [vmem:[%s2520_s12 + $0x8] sm:$0xff]  }
 0x419   : > { %2017 = vmatmul.mubr.msk.bf16.vlgmr.msra.gmra.mxu1 %vm1038_vm4, %v1085_v5  ;;  %v2113_v5 = vld [vmem:[%s2520_s12] sm:$0xff]  }
 0x41a   : > { %2011 = vmatmul.mubr.msk.bf16.vlgmr.msra.gmra.mxu0 %vm1038_vm4, %v1084_v6  ;;  %2028 = vmatprep.mubr.msk.bf16.mxu1 %vm2154_vm1, %v2153_v9  ;;  %v2114_v6 = vld [vmem:[%s2518_s10] sm:$0xff]  }
 0x41b   : > { %2021 = vmatpush3.bf16.msra.mxu0 %v1095_v60  ;;  %2022 = vmatprep.mubr.msk.bf16.mxu0 %vm2154_vm1, %v2153_v9 }
 0x41c   : > { %v2140_v7 = vpop.eup %2139  ;;  %2032 = vmatprep.subr.bf16.mxu0 %v2153_v9  ;;  %2027 = vmatpush3.bf16.msra.mxu1 %v2107_v11 }
 0x41d   : > { %v1082_v8 = vmul.f32 %v2140_v7, %v2132_v54  ;;  %2038 = vmatprep.subr.bf16.mxu1 %v2153_v9 }
 0x41f   : > { %v1086_v10 = vpack.c.bf16 %v1082_v8, %v1082_v8 }
 0x422   : > { %2023 = vmatmul.mubr.msk.bf16.vlgmr.msra.gmra.mxu0 %vm1038_vm4, %v1086_v10 }
 0x423   : > { %2034 = vmatprep.mubr.msk.bf16.mxu0 %vm2154_vm1, %v2153_v9  ;;  %2033 = vmatpush3.bf16.msra.mxu0 %v2108_v12  ;;  %v1863_v12 = vld [vmem:[%s2516_s8] ss:$0 sm:$0xff] }
 0x424   : > { %2044 = vmatprep.subr.bf16.mxu0 %v2153_v9 }
 0x4d1   : > { %v1131_v13 = vpop.f32.mrf.mxu1 }
 0x4d2   : > { %v1266_v15 = vpack.c.bf16 %v1131_v13, %v1131_v13 }
 0x4d3   : > { %v2006_v16 = vpop.f32.mrf.mxu1 }
 0x4d4   : > { %2029 = vmatmul.mubr.msk.bf16.vlgmr.msra.gmra.mxu1 %vm851_vm2, %v1266_v15 }
 0x4d5   : > { %v1134_v17 = vpop.f32.mrf.mxu1  ;;  %2039 = vmatpush3.bf16.msra.mxu1 %v2109_v14  ;;  %2040 = vmatprep.mubr.msk.bf16.mxu1 %vm2154_vm1, %v2153_v9  ;;  %v1864_v14 = vld [vmem:[%s2517_s9] ss:$0 sm:$0xff] }
 0x4d6   : > { %2050 = vmatprep.subr.bf16.mxu1 %v2153_v9  ;;  %v2115_v17 = vld [vmem:[%s2522_s14 + $0x38] sm:$0xff]  }
 0x4d7   : > { %v2007_v18 = vpop.f32.mrf.mxu1 }
 0x4d9   : > { %v1217_v19 = vpop.f32.mrf.mxu1 }
 0x4da   : > { %v1174_v20 = vpop.f32.mrf.mxu0  ;;  %v1268_v21 = vpack.c.bf16 %v1217_v19, %v1217_v19  ;;  %v2116_v19 = vld [vmem:[%s2522_s14 + $0x30] sm:$0xff]  }
 0x4db   : > { %v1267_v23 = vpack.c.bf16 %v1174_v20, %v1174_v20  ;;  %v2018_v24 = vpop.f32.mrf.mxu1  ;;  %v2117_v20 = vld [vmem:[%s2522_s14 + $0x28] sm:$0xff]  }
 0x4dc   : > { %v2012_v25 = vpop.f32.mrf.mxu0  ;;  %2041 = vmatmul.mubr.msk.bf16.vlgmr.msra.gmra.mxu1 %vm851_vm2, %v1268_v21  ;;  %v2118_v21 = vld [vmem:[%s2522_s14 + $0x20] sm:$0xff]   ;;  %v2121_v24 = vld [vmem:[%s2522_s14 + $0x8] sm:$0xff]  }
 0x4dd   : > { %2035 = vmatmul.mubr.msk.bf16.vlgmr.msra.gmra.mxu0 %vm851_vm2, %v1267_v23  ;;  %v1220_v26 = vpop.f32.mrf.mxu1  ;;  %2054 = vmatprep.mubr.msk.bf16.mxu1 %vm2154_vm1, %v2153_v9  ;;  %v2120_v23 = vld [vmem:[%s2522_s14 + $0x10] sm:$0xff]   ;;  %v2122_v25 = vld [vmem:[%s2522_s14] sm:$0xff]  }
 0x4de   : > { %2045 = vmatpush3.bf16.msra.mxu0 %v2110_v22  ;;  %v1177_v27 = vpop.f32.mrf.mxu0  ;;  %2046 = vmatprep.mubr.msk.bf16.mxu0 %vm2154_vm1, %v2153_v9  ;;  %v2119_v22 = vld [vmem:[%s2522_s14 + $0x18] sm:$0xff]   ;;  %v1869_v26 = vld [vmem:[%s2521_s13] ss:$0 sm:$0xff] }
 0x4df   : > { %v2019_v28 = vpop.f32.mrf.mxu1  ;;  %2058 = vmatprep.subr.bf16.mxu0 %v2153_v9 }
 0x4e0   : > { %v2013_v29 = vpop.f32.mrf.mxu0 }
 0x4e2   : > { %v1260_v31 = vpop.f32.mrf.mxu0 }
 0x4e3   : > { %v1269_v32 = vpack.c.bf16 %v1260_v31, %v1260_v31 }
 0x4e4   : > { %v2024_v33 = vpop.f32.mrf.mxu0 }
 0x4e5   : > { %2047 = vmatmul.mubr.msk.bf16.vlgmr.msra.gmra.mxu0 %vm851_vm2, %v1269_v32 }
 0x4e6   : > { %v1263_v34 = vpop.f32.mrf.mxu0  ;;  %2062 = vmatprep.mubr.msk.bf16.mxu0 %vm2154_vm1, %v2153_v9  ;;  %2059 = vmatpush3.bf16.msra.mxu0 %v2111_v4 }
 0x4e7   : > { %2060 = vmatprep.subr.bf16.mxu0 %v2153_v9 }
 0x4e8   : > { %v2025_v35 = vpop.f32.mrf.mxu0 }
 0x4ea   : > { %2061 = vmatpush3.bf16.msra.mxu0 %v2113_v5 }
 0x594   : > { %v1321_v36 = vpop.f32.mrf.mxu1 }
 0x595   : > { %v1474_v45 = vsel %vm521_vm0, %v1321_v36, 0.0 }
 0x596   : > { %v2030_v37 = vpop.f32.mrf.mxu1 }
 0x598   : > { %v1324_v38 = vpop.f32.mrf.mxu1 }
 0x599   : > { %v1865_v38 = vld [vmem:[%s2519_s11] ss:$0 sm:$0xff] }
 0x59a   : > { %v2031_v39 = vpop.f32.mrf.mxu1 }
 0x59c   : > { %v1419_v40 = vpop.f32.mrf.mxu1 }
 0x59d   : > { %v1370_v41 = vpop.f32.mrf.mxu0  ;;  %v1477_v51 = vsel %vm521_vm0, %v1419_v40, 0.0 }
 0x59e   : > { %v1475_v42 = vsel %vm521_vm0, %v1370_v41, 0.0  ;;  %v2042_v43 = vpop.f32.mrf.mxu1 }
 0x59f   : > { %v2036_v44 = vpop.f32.mrf.mxu0  ;;  %v1476_v47 = vadd.f32 %v1475_v42, %v1474_v45  ;;  %v1873_v45 = vld [vmem:[%s2523_s15] ss:$0 sm:$0xff] }
 0x5a0   : > { %v1422_v46 = vpop.f32.mrf.mxu1 }
 0x5a1   : > { %v1373_v48 = vpop.f32.mrf.mxu0  ;;  %v1478_v52 = vadd.f32 %v1477_v51, %v1476_v47 }
 0x5a2   : > { %v2043_v49 = vpop.f32.mrf.mxu1 }
 0x5a3   : > { %v2037_v50 = vpop.f32.mrf.mxu0 }
 0x5a5   : > { %v1468_v53 = vpop.f32.mrf.mxu0 }
 0x5a6   : > { %v1479_v54 = vsel %vm521_vm0, %v1468_v53, 0.0 }
 0x5a7   : > { %v1480_v56 = vadd.f32 %v1479_v54, %v1478_v52  ;;  %v2048_v57 = vpop.f32.mrf.mxu0 }
 0x5a9   : > { %v1488_v58 = vadd.f32 %v1862_v55, %v1480_v56  ;;  %v1471_v59 = vpop.f32.mrf.mxu0 }
 0x5ab   : > { %v2049_v60 = vpop.f32.mrf.mxu0  ;;  %v2427_v61 = vadd.f32 %v1488_v58, %v2257_v0  ;;  %v2112_v0 = vld [vmem:[%s2518_s10 + $0x8] sm:$0xff]  }
 0x5ac   : > { %2051 = vmatpush3.bf16.msra.mxu1 %v2112_v0 }
 0x5ad   : > { %v1492_v62 = vsel %vm521_vm0, %v2427_v61, 0.0  ;;  %2052 = vmatprep.subr.bf16.mxu1 %v2153_v9 }
 0x5ae   : > { %1493 = vadd.xlane.f32.xlu1 %v1492_v62 }
 0x5b0   : > { %2053 = vmatpush3.bf16.msra.mxu1 %v2114_v6 }
 0x5b1   : > { %2066 = vmatprep.subr.bf16.mxu1 %v2153_v9 }
 0x637   : > { %v1494_v63 = vpop.xlane.xlu1 %1493 }
 0x638   : > { %v1495_v30 = vmul.f32 0.03125, %v1494_v63 }
 0x63a   : > { %v1496_v1 = vsub.f32 %v2427_v61, %v1495_v30 }
 0x63c   : > { %v1497_v2 = vmul.f32 %v1496_v1, %v1496_v1 }
 0x63e   : > { %v1498_v3 = vsel %vm521_vm0, %v1497_v2, 0.0 }
 0x63f   : > { %1499 = vadd.xlane.f32.xlu1 %v1498_v3 }
 0x6c8   : > { %v1500_v7 = vpop.xlane.xlu1 %1499 }
 0x6c9   : > { %v1501_v8 = vmul.f32 0.03125, %v1500_v7 }
 0x6cb   : > { %v1502_v10 = vadd.f32 1e-05, %v1501_v8 }
 0x6cd   : > { %2141 = vrsqrt.f32 %v1502_v10 }
 0x6da   : > { %v2142_v11 = vpop.eup %2141 }
 0x6db   : > { %v1504_v13 = vmul.f32 %v2142_v11, %v1496_v1 }
 0x6dd   : > { %v1511_v15 = vmul.f32 %v1863_v12, %v1504_v13 }
 0x6df   : > { %v1518_v16 = vadd.f32 %v1864_v14, %v1511_v15 }
 0x6e1   : > { %v1519_v18 = vpack.c.bf16 %v1518_v16, %v1518_v16 }
 0x6e3   : > { %2055 = vmatmul.mubr.msk.bf16.vlgmr.msra.gmra.mxu1 %vm521_vm0, %v1519_v18  ;;  %2063 = vmatmul.mubr.msk.bf16.vlgmr.msra.gmra.mxu0 %vm521_vm0, %v1519_v18 }
 0x6e4   : > { %2067 = vmatpush3.bf16.msra.mxu1 %v2115_v17  ;;  %2082 = vmatprep.mubr.msk.bf16.mxu1 %vm2154_vm1, %v2153_v9 }
 0x6e5   : > { %2068 = vmatprep.subr.bf16.mxu1 %v2153_v9 }
 0x6e8   : > { %2069 = vmatpush3.bf16.msra.mxu1 %v2116_v19 }
 0x6e9   : > { %2070 = vmatprep.subr.bf16.mxu1 %v2153_v9 }
 0x6ec   : > { %2071 = vmatpush3.bf16.msra.mxu1 %v2117_v20 }
 0x6ed   : > { %2072 = vmatprep.subr.bf16.mxu1 %v2153_v9 }
 0x6f0   : > { %2073 = vmatpush3.bf16.msra.mxu1 %v2118_v21 }
 0x6f1   : > { %2074 = vmatprep.subr.bf16.mxu1 %v2153_v9 }
 0x6f4   : > { %2075 = vmatpush3.bf16.msra.mxu1 %v2119_v22 }
 0x6f5   : > { %2076 = vmatprep.subr.bf16.mxu1 %v2153_v9 }
 0x6f8   : > { %2077 = vmatpush3.bf16.msra.mxu1 %v2120_v23 }
 0x6f9   : > { %2078 = vmatprep.subr.bf16.mxu1 %v2153_v9 }
 0x6fc   : > { %2079 = vmatpush3.bf16.msra.mxu1 %v2121_v24 }
 0x6fd   : > { %2080 = vmatprep.subr.bf16.mxu1 %v2153_v9 }
 0x700   : > { %2081 = vmatpush3.bf16.msra.mxu1 %v2122_v25 }
 0x7a3   : > { %v1580_v27 = vpop.f32.mrf.mxu1  ;;  %v1643_v28 = vpop.f32.mrf.mxu0 }
 0x7a4   : > { %v1644_v29 = vadd.f32 %v1869_v26, %v1643_v28  ;;  %v1581_v41 = vadd.f32 %v1865_v38, %v1580_v27 }
 0x7a5   : > { %v2056_v31 = vpop.f32.mrf.mxu1  ;;  %v2064_v32 = vpop.f32.mrf.mxu0 }
 0x7a6   : > { %v1650_v33 = vmul.f32 0.70710677, %v1644_v29  ;;  %v1649_v39 = vmul.f32 0.5, %v1644_v29 }
 0x7a7   : > { %v1583_v34 = vpop.f32.mrf.mxu1  ;;  %v1646_v35 = vpop.f32.mrf.mxu0 }
 0x7a8   : > { %2143 = verf.f32 %v1650_v33 }
 0x7a9   : > { %v2057_v9 = vpop.f32.mrf.mxu1  ;;  %v2065_v36 = vpop.f32.mrf.mxu0 }
 0x7b5   : > { %v2144_v37 = vpop.eup %2143 }
 0x7b6   : > { %v1652_v40 = vadd.f32 1.0, %v2144_v37 }
 0x7b8   : > { %v1653_v42 = vmul.f32 %v1652_v40, %v1649_v39 }
 0x7ba   : > { %v1654_v43 = vmul.f32 %v1653_v42, %v1581_v41 }
 0x7bc   : > { %v1655_v44 = vpack.c.bf16 %v1654_v43, %v1654_v43 }
 0x7be   : > { %2083 = vmatmul.mubr.bf16.vlgmr.msra.gmra.mxu1 %v1655_v44 }
 0x87e   : > { %v1761_v46 = vpop.f32.mrf.mxu1 }
 0x87f   : > { %v1762_v47 = vadd.f32 %v1873_v45, %v1761_v46 }
 0x880   : > { %v2084_v48 = vpop.f32.mrf.mxu1 }
 0x881   : > { %v1767_v49 = vadd.f32 %v1762_v47, %v2427_v61 }
 0x882   : > { %v1764_v50 = vpop.f32.mrf.mxu1 }
 0x883   : > { %1768 = vst.msk [vmem:[%s516_s20] sm:$0xff] %vm521_vm0, %v1767_v49 }
 0x884   : > { %v2085_v51 = vpop.f32.mrf.mxu1 }
 0x885 PF: > { %s26_s21 = sadd.s32 1, %s2151_s21  }
 0x886   : > { %p23_p4 = scmp.ge.s32.totalorder %s26_s21, 4  }
 0x888   :  { %25 = sbr.rel (!%p23_p4) target bundleno = 2 (0x2), region = 114 }

// kernel: transformer_forward.3
= control target key start
LH: loop header
LB: loop body
LE: loop exit
PB: predicated region body
PF: predicated region fallthrough
CT: control target
= control target key end

     0   :  { %s2821_s0 = inlined_call_operand.hbm [shape: f32[2,8,32], index: 0, kind: input, shape index: {}, may-alias: {0,16}]   ;;  %s2822_s1 = inlined_call_operand.vmem [shape: f32[1,32], index: 1, kind: input, shape index: {}]   ;;  %s2823_s2 = inlined_call_operand.vmem [shape: f32[1,32], index: 2, kind: input, shape index: {}]   ;;  %s2824_s3 = inlined_call_operand.vmem [shape: bf16[4,32,16], index: 3, kind: input, shape index: {}]   ;;  %s2825_s4 = inlined_call_operand.vmem [shape: bf16[32,32], index: 4, kind: input, shape index: {}]   ;;  %s2826_s5 = inlined_call_operand.vmem [shape: bf16[4,16,32], index: 5, kind: input, shape index: {}]   ;;  %s2827_s6 = inlined_call_operand.vmem [shape: f32[1,32], index: 6, kind: input, shape index: {}]   ;;  %s2828_s7 = inlined_call_operand.vmem [shape: f32[4,8,8], index: 7, kind: input, shape index: {}]   ;;  %s2829_s8 = inlined_call_operand.vmem [shape: f32[1,32], index: 8, kind: input, shape index: {}]   ;;  %s2830_s9 = inlined_call_operand.vmem [shape: f32[1,32], index: 9, kind: input, shape index: {}]   ;;  %s2831_s10 = inlined_call_operand.vmem [shape: bf16[32,128], index: 10, kind: input, shape index: {}]   ;;  %s2832_s11 = inlined_call_operand.vmem [shape: f32[1,128], index: 11, kind: input, shape index: {}]   ;;  %s2833_s12 = inlined_call_operand.vmem [shape: bf16[32,128], index: 12, kind: input, shape index: {}]   ;;  %s2834_s13 = inlined_call_operand.vmem [shape: f32[1,128], index: 13, kind: input, shape index: {}]   ;;  %s2835_s14 = inlined_call_operand.vmem [shape: bf16[128,32], index: 14, kind: input, shape index: {}]   ;;  %s2836_s15 = inlined_call_operand.vmem [shape: f32[1,32], index: 15, kind: input, shape index: {}]   ;;  %s2837_s16 = inlined_call_operand.hbm [shape: f32[2,8,32], index: 16, kind: output, shape index: {}, may-alias: {0,16}]  }
   0x1   :  { %2849 = sst [smem:[#allocation14_spill]] %s2821_s0 }
   0x2   :  { %2850 = sst [smem:[#allocation15_spill]] %s2832_s11 }
   0x3   :  { %2851 = sst [smem:[#allocation16_spill]] %s2836_s15 }
   0x4   :  { %2852 = sst [smem:[#allocation17_spill]] %s2837_s16 }
   0x5   :  { %21 = vsyncpa [#allocation3], 0 }
   0x6   :  { %23 = vsyncpa [#allocation3 + $0x1], 0 }
   0x7   :  { %24 = vsyncpa [#allocation4], 0 }
   0x8   :  { %26 = vsyncpa [#allocation4 + $0x1], 0  ;;  %s2421_s21 = smov 0   ;;  %s2423_s22 = smov 0  }
   0x9   :  { %s2425_s23 = smov 0   ;;  %s2427_s24 = smov 0  }
   0xa LB: > { %2853 = sst [smem:[#allocation8_spill]] %s2317_s21  ;;  %s2442_s25 = sadd.s32 4294967295, %s2329_s24   ;;  %s2329_s24 = sphi %s2427_s24, %s2878_s24   ;;  %s2325_s23 = sphi %s2425_s23, %s2880_s23   ;;  %s2321_s22 = sphi %s2423_s22, %s2882_s22   ;;  %s2317_s21 = sphi %s2421_s21, %s2881_s21  }
   0xb   : > { %2854 = sst [smem:[#allocation9_spill]] %s2325_s23  ;;  %s1873_s26 = sadd.s32 4294967294, %s2329_s24  }
   0xc   : > { %s2446_s27 = sadd.s32 1, %s2329_s24   ;;  %s39_s28 = sadd.s32 1, %s2325_s23 }
   0xd   : > { %2855 = sst [smem:[#allocation10_spill]] %s2446_s27  ;;  %s36_s29 = ssub.s32 %s2329_s24, %s2446_s27 }
   0xe   : > { %p46_p0 = scmp.ne.s32.totalorder %s2325_s23, %s2321_s22  ;;  %p37_p1 = scmp.eq.s32.totalorder %s36_s29, 0 }
   0xf   : > { %p47_p2 = scmp.eq.s32.totalorder %s2329_s24, 0  ;;  %p52_p3 = scmp.ne.s32.totalorder %s2321_s22, %s2317_s21 }
  0x10   : > { %p53_p4 = scmp.eq.s32.totalorder %s2442_s25, 0  ;;  %p391_p7 = scmp.eq.s32.totalorder %s2442_s25, 1 }
  0x11   : > { %s2458_s30 = scalar_select %p37_p1, %s2325_s23, %s39_s28  }
  0x12   : > { %p2460_p5 = por %p47_p2, %p46_p0  ;;  %p2464_p6 = por %p53_p4, %p52_p3 }
  0x13   : > { %2856 = sst [smem:[#allocation11_spill]] %s2458_s30  ;;  %p397_p8 = scmp.eq.s32.totalorder %s1873_s26, 1 }
  0x14   : > { %s2858_s17 = scalar_select %p2464_p6, 1, 0 }
  0x15   : > { %p2152_p10 = scmp.lt.s32.totalorder %s2329_s24, 2  ;;  %p2471_p11 = por %p391_p7, %p46_p0 }
  0x16   : > { %p2475_p12 = por %p397_p8, %p52_p3  ;;  %s462_s20 = sand.u32 1, %s2325_s23  }
  0x17   : > { %s2859_s18 = scalar_select %p2471_p11, 1, 0 }
  0x18   : > { %s2861_s19 = scalar_select %p2475_p12, 1, 0 }
  0x19   : > { %2860 = sst [smem:[#allocation12_spill]] %s2859_s18  ;;  %s1877_s28 = sshll.u32 %s2329_s24, 7 }
  0x1a   : > { %2862 = sst [smem:[#allocation13_spill]] %s2861_s19  ;;  %s1876_s29 = sshll.u32 %s462_s20, 3 }
  0x1b   : > { %s2863_s21 = sld [smem:[#allocation14_spill]]  ;;  %s466_s26 = scalar_lea.vmem [#allocation2], %s1876_s29 }
  0x1c   : > { %s473_s11 = sshll.u32 %s466_s26, 4  ;;  %p2488_p13 = pnand %p2152_p10, %p2460_p5  ;;  %s2492_s11 = int_to_ptr.vmem [resolvable:$true] %s473_s11 }
  0x1d   : > { %s463_s23 = scalar_lea.sflag [#allocation3], %s462_s20 }
  0x1e   : > { %p2239_p3 = pneg %p2488_p13 }
  0x21   : > { %s2864_s16 = smov %s2863_s21  ;;  %s2484_s15 = scalar_lea.hbm %s2863_s21, %s1877_s28 }
  0x22   : > { %s2237_s19 = scalar_lea.hbm %s2484_s15, 128  ;;  %s2242_s30 = scalar_lea.hbm %s2864_s16, 256 }
  0x23   : > { %p2238_p2 = scmp.ne.s32.totalorder %s2484_s15, %s2237_s19  ;;  %p2243_p5 = scmp.lt.s32.totalorder %s2484_s15, %s2864_s16 }
  0x24   : > { %p2244_p8 = scmp.lt.s32.totalorder %s2242_s30, %s2237_s19 }
  0x25   : > { %p2240_p4 = pnand %p2239_p3, %p2238_p2 }
  0x26   : > { %p2245_p10 = por %p2244_p8, %p2243_p5 }
  0x27   : > { %p2241_p7 = pneg %p2240_p4 }
  0x29   : > { %p2246_p9 = pnand %p2245_p10, %p2241_p7 }
  0x2b   : > { %2249 = shalt.err (!%p2246_p9)
}
  0x2c   : > { %s2250_s20 = scalar_lea.vmem %s2492_s11, 128  ;;  %s2331_s29 = smov [#allocation2]  }
  0x2d   : > { %p2251_p0 = scmp.ne.s32.totalorder %s2492_s11, %s2250_s20  ;;  %s2255_s26 = sshll.u32 %s2331_s29, 4  ;;  %s2256_s26 = int_to_ptr.vmem [resolvable:$false] %s2255_s26 }
  0x2e   : > { %s2257_s21 = scalar_lea.vmem %s2256_s26, 256  ;;  %p2258_p4 = scmp.lt.s32.totalorder %s2492_s11, %s2256_s26 }
  0x2f   : > { %p2253_p1 = pnand %p2251_p0, %p2239_p3  ;;  %p2259_p12 = scmp.lt.s32.totalorder %s2257_s21, %s2250_s20 }
  0x31   : > { %p2254_p2 = pneg %p2253_p1  ;;  %p2260_p11 = por %p2259_p12, %p2258_p4 }
  0x33   : > { %p2261_p6 = pnand %p2260_p11, %p2254_p2 }
  0x35   : > { %2264 = shalt.err (!%p2261_p6)
}
  0x36   : > { %2147 = dma.hbm_to_vmem [thread:$0]  (!%p2488_p13), %s2484_s15, 128, %s2492_s11, %s463_s23  }
  0x37   : > { %p2866_p9 = scmp.lt.s32.totalorder %s2329_s24, 3  ;;  %p2867_p7 = scmp.ge.s32.totalorder %s2329_s24, 1 }
  0x39   : > { %p479_p0 = pnand %p2867_p7, %p2866_p9 }
  0x3a   : > { %s2519_s19 = sand.u32 (!%p479_p0), 1, %s2321_s22   ;;  %p2868_p6 = scmp.ne.s32.totalorder (!%p479_p0), %s2858_s17, 0 }
  0x3b   : > { %482 = sbr.rel (%p479_p0) target bundleno = 2243 (0x8c3), region = 84  ;;  %s1879_s27 = sshll.u32 (!%p479_p0), %s2519_s19, 3 }
  0x3c   : > { %s485_s30 = scalar_lea.sflag (!%p479_p0), [#allocation3], %s2519_s19  ;;  %s488_s18 = scalar_lea.vmem (!%p479_p0), [#allocation2], %s1879_s27 }
  0x40   : > { %2308 = dma.done.wait (%p2868_p6), %s485_s30, 128  }
  0x41   : > { %2310 = vsyncadd (%p2868_p6), %s485_s30, 4294967168  ;;  %vm541_vm0 = vcmask 261120   ;;  %v2529_v0 = vld [vmem:[%s488_s18] sm:$0xff]  ;;  %v2332_v9 = vmov 0.0   ;;  %vm2333_vm1 = vmmov 0   ;;  %v2195_v24 = vld [vmem:[%s2824_s3 + $0x18] sm:$0xff]   ;;  %v1047_v58 = vlaneseq }
  0x42   : > { %v542_v1 = vsel %vm541_vm0, %v2529_v0, 0.0  ;;  %v2189_v7 = vld [vmem:[%s2825_s4 + $0x8] sm:$0xff]   ;;  %1992 = vmatprep.subr.bf16.mxu0 %v2332_v9  ;;  %2016 = vmatprep.subr.bf16.mxu1 %v2332_v9  ;;  %v2191_v10 = vld [vmem:[%s2825_s4] sm:$0xff]   ;;  %v2196_v25 = vld [vmem:[%s2824_s3 + $0x10] sm:$0xff]   ;;  %vm871_vm2 = vcmask 130048   ;;  %vm1058_vm4 = vcmask 64512  }
  0x43   : > { %543 = vadd.xlane.f32.xlu0 %v542_v1  ;;  %v2190_v8 = vld [vmem:[%s2824_s3 + $0x28] sm:$0xff]   ;;  %1993 = vmatpush3.bf16.msra.mxu0 %v2189_v7  ;;  %v2192_v11 = vld [vmem:[%s2824_s3 + $0x20] sm:$0xff]   ;;  %v2197_v26 = vld [vmem:[%s2824_s3 + $0x38] sm:$0xff]   ;;  %v1048_v60 = vshrl.u32 %v1047_v58, 7  ;;  %v1050_v61 = vand.u32 127, %v1047_v58  ;;  %s2334_s26 = smov 112  }
  0x44   : > { %2017 = vmatpush3.bf16.msra.mxu1 %v2190_v8  ;;  %1994 = vmatprep.subr.bf16.mxu0 %v2332_v9  ;;  %v1881_v16 = vld [vmem:[%s2822_s1] ss:$0 sm:$0xff]  ;;  %v2193_v21 = vld [vmem:[%s2824_s3 + $0x8] sm:$0xff]   ;;  %v2198_v27 = vld [vmem:[%s2824_s3 + $0x30] sm:$0xff]   ;;  %vm1113_vm5 = vcmask 1043456   ;;  %s2869_s17 = sld [smem:[#allocation15_spill]] }
  0x45   : > { %2018 = vmatprep.subr.bf16.mxu1 %v2332_v9  ;;  %1996 = vmatprep.mubr.msk.bf16.mxu0 %vm2333_vm1, %v2332_v9  ;;  %v1882_v18 = vld [vmem:[%s2823_s2] ss:$0 sm:$0xff]  ;;  %vm1051_vm3 = vcmp.gt.s32.totalorder %v1050_v61, %v1048_v60  ;;  %s2870_s20 = sld [smem:[#allocation16_spill]]  ;;  %s536_s21 = scalar_lea.vmem [#allocation5], %s1879_s27 }
  0x46   : > { %2020 = vmatprep.mubr.msk.bf16.mxu1 %vm2333_vm1, %v2332_v9  ;;  %v2194_v23 = vld [vmem:[%s2824_s3] sm:$0xff]   ;;  %s2871_s29 = sld [smem:[#allocation12_spill]]  ;;  %s1803_s30 = sshll.u32 %s536_s21, 4  ;;  %s2779_s30 = int_to_ptr.vmem [resolvable:$true] %s1803_s30 }
  0x47   : > { %1995 = vmatpush3.bf16.msra.mxu0 %v2191_v10  ;;  %v863_v59 = vld [vmem:[%s2828_s7] sm:$0xff]  ;;  %s2872_s15 = sld [smem:[#allocation17_spill]]  ;;  %s2265_s27 = scalar_lea.vmem %s2779_s30, 128 }
  0x48   : > { %2019 = vmatpush3.bf16.msra.mxu1 %v2192_v11  ;;  %2000 = vmatprep.subr.bf16.mxu0 %v2332_v9  ;;  %v867_v62 = vmul.f32 4.0, %v863_v59  ;;  %p2266_p11 = scmp.ne.s32.totalorder %s2779_s30, %s2265_s27 }
  0x49   : > { %2032 = vmatprep.subr.bf16.mxu1 %v2332_v9 }
  0x4c   : > { %p2873_p12 = scmp.ne.s32.totalorder %s2871_s29, 0 }
  0x4e   : > { %p2267_p13 = pnand %p2266_p11, %p2873_p12 }
  0x50   : > { %p2268_p1 = pneg %p2267_p13 }
  0xcc   : > { %v544_v2 = vpop.xlane.xlu0 %543 }
  0xcd   : > { %v546_v3 = vmul.f32 0.03125, %v544_v2 }
  0xcf   : > { %v547_v4 = vsub.f32 %v2529_v0, %v546_v3  ;;  %v864_v3 = vld [vmem:[%s2828_s7 + $0x8] sm:$0xff] }
  0xd0   : > { %v868_v8 = vmul.f32 4.0, %v864_v3 }
  0xd1   : > { %v548_v5 = vmul.f32 %v547_v4, %v547_v4 }
  0xd3   : > { %v549_v6 = vsel %vm541_vm0, %v548_v5, 0.0 }
  0xd4   : > { %550 = vadd.xlane.f32.xlu0 %v549_v6 }
 0x15d   : > { %v551_v12 = vpop.xlane.xlu0 %550 }
 0x15e   : > { %v552_v13 = vmul.f32 0.03125, %v551_v12 }
 0x160   : > { %v553_v14 = vadd.f32 1e-05, %v552_v13 }
 0x162   : > { %2215 = vrsqrt.f32 %v553_v14 }
 0x16f   : > { %v2216_v15 = vpop.eup %2215 }
 0x170   : > { %v555_v17 = vmul.f32 %v2216_v15, %v547_v4  ;;  %v865_v4 = vld [vmem:[%s2828_s7 + $0x10] sm:$0xff] }
 0x171   : > { %v869_v10 = vmul.f32 4.0, %v865_v4 }
 0x172   : > { %v562_v19 = vmul.f32 %v1881_v16, %v555_v17 }
 0x174   : > { %v569_v20 = vadd.f32 %v1882_v18, %v562_v19  ;;  %v866_v18 = vld [vmem:[%s2828_s7 + $0x18] sm:$0xff] }
 0x176   : > { %v570_v22 = vpack.c.bf16 %v569_v20, %v569_v20 }
 0x178   : > { %1997 = vmatmul.mubr.msk.bf16.vlgmr.msra.gmra.mxu0 %vm541_vm0, %v570_v22  ;;  %2021 = vmatmul.mubr.msk.bf16.vlgmr.msra.gmra.mxu1 %vm541_vm0, %v570_v22 }
 0x179   : > { %2001 = vmatpush3.bf16.msra.mxu0 %v2193_v21  ;;  %2004 = vmatprep.mubr.msk.bf16.mxu0 %vm2333_vm1, %v2332_v9 }
 0x17a   : > { %2002 = vmatprep.subr.bf16.mxu0 %v2332_v9  ;;  %2034 = vmatprep.mubr.msk.bf16.mxu1 %vm2333_vm1, %v2332_v9 }
 0x17d   : > { %2003 = vmatpush3.bf16.msra.mxu0 %v2194_v23 }
 0x17e   : > { %2008 = vmatprep.subr.bf16.mxu0 %v2332_v9 }
 0x180   : > { %2005 = vmatmul.mubr.msk.bf16.vlgmr.msra.gmra.mxu0 %vm541_vm0, %v570_v22 }
 0x181   : > { %2009 = vmatpush3.bf16.msra.mxu0 %v2195_v24  ;;  %2012 = vmatprep.mubr.msk.bf16.mxu0 %vm2333_vm1, %v2332_v9 }
 0x182   : > { %2010 = vmatprep.subr.bf16.mxu0 %v2332_v9 }
 0x185   : > { %2011 = vmatpush3.bf16.msra.mxu0 %v2196_v25  ;;  %v870_v25 = vmul.f32 4.0, %v866_v18 }
 0x186   : > { %2024 = vmatprep.subr.bf16.mxu0 %v2332_v9 }
 0x188   : > { %2013 = vmatmul.mubr.msk.bf16.vlgmr.msra.gmra.mxu0 %vm541_vm0, %v570_v22 }
 0x189   : > { %2025 = vmatpush3.bf16.msra.mxu0 %v2197_v26  ;;  %2028 = vmatprep.mubr.msk.bf16.mxu0 %vm2333_vm1, %v2332_v9 }
 0x18a   : > { %2026 = vmatprep.subr.bf16.mxu0 %v2332_v9 }
 0x18d   : > { %2027 = vmatpush3.bf16.msra.mxu0 %v2198_v27 }
 0x18e   : > { %2038 = vmatprep.subr.bf16.mxu0 %v2332_v9 }
 0x190   : > { %2029 = vmatmul.mubr.msk.bf16.vlgmr.msra.gmra.mxu0 %vm541_vm0, %v570_v22 }
 0x191   : > { %2040 = vmatprep.mubr.msk.bf16.mxu0 %vm2333_vm1, %v2332_v9 }
 0x238   : > { %v624_v28 = vpop.f32.mrf.mxu0  ;;  %v797_v29 = vpop.f32.mrf.mxu1 }
 0x239   : > { %v2602_v30 = vpack.c.bf16 %v624_v28, %v624_v28  ;;  %v857_v44 = vmul.f32 0.25, %v797_v29 }
 0x23a   : > { %v1998_v31 = vpop.f32.mrf.mxu0  ;;  %v2022_v32 = vpop.f32.mrf.mxu1 }
 0x23b   : > { %v876_v33 = vsel %vm871_vm2, %v2602_v30, 0  ;;  %v861_v48 = vpack.c.bf16 %v857_v44, %v857_v44 }
 0x23c   : > { %v627_v34 = vpop.f32.mrf.mxu0  ;;  %v800_v35 = vpop.f32.mrf.mxu1  ;;  %2033 = vmatpush3.bf16.xpose.msra.mxu1 %v876_v33  ;;  %2039 = vmatpush3.bf16.xpose.msra.mxu0 %v876_v33 }
 0x23d   : > { %2044 = vmatprep.subr.bf16.mxu1 %v2332_v9  ;;  %2050 = vmatprep.subr.bf16.mxu0 %v2332_v9 }
 0x23e   : > { %v1999_v36 = vpop.f32.mrf.mxu0  ;;  %v2023_v37 = vpop.f32.mrf.mxu1 }
 0x240   : > { %v693_v38 = vpop.f32.mrf.mxu0 }
 0x241   : > { %v855_v39 = vmul.f32 0.25, %v693_v38 }
 0x242   : > { %v2006_v40 = vpop.f32.mrf.mxu0 }
 0x243   : > { %v859_v41 = vpack.c.bf16 %v855_v39, %v855_v39 }
 0x244   : > { %v696_v42 = vpop.f32.mrf.mxu0 }
 0x245   : > { %2035 = vmatmul.mubr.msk.bf16.vlgmr.msra.gmra.mxu1 %vm871_vm2, %v859_v41 }
 0x246   : > { %2045 = vmatpush3.bf16.xpose.msra.mxu1 %v876_v33  ;;  %v2007_v43 = vpop.f32.mrf.mxu0  ;;  %2046 = vmatprep.mubr.msk.bf16.mxu1 %vm2333_vm1, %v2332_v9 }
 0x247   : > { %2056 = vmatprep.subr.bf16.mxu1 %v2332_v9 }
 0x248   : > { %v745_v45 = vpop.f32.mrf.mxu0 }
 0x249   : > { %v856_v46 = vmul.f32 0.25, %v745_v45 }
 0x24a   : > { %v2014_v47 = vpop.f32.mrf.mxu0 }
 0x24b   : > { %v860_v49 = vpack.c.bf16 %v856_v46, %v856_v46 }
 0x24c   : > { %v748_v50 = vpop.f32.mrf.mxu0 }
 0x24d   : > { %2041 = vmatmul.mubr.msk.bf16.vlgmr.msra.gmra.mxu0 %vm871_vm2, %v860_v49  ;;  %2047 = vmatmul.mubr.msk.bf16.vlgmr.msra.gmra.mxu1 %vm871_vm2, %v861_v48 }
 0x24e   : > { %2051 = vmatpush3.bf16.xpose.msra.mxu0 %v876_v33  ;;  %v2015_v51 = vpop.f32.mrf.mxu0  ;;  %2052 = vmatprep.mubr.msk.bf16.mxu0 %vm2333_vm1, %v2332_v9 }
 0x24f   : > { %2062 = vmatprep.subr.bf16.mxu0 %v2332_v9  ;;  %2058 = vmatprep.mubr.msk.bf16.mxu1 %vm2333_vm1, %v2332_v9 }
 0x250   : > { %v849_v52 = vpop.f32.mrf.mxu0 }
 0x251   : > { %v858_v53 = vmul.f32 0.25, %v849_v52 }
 0x252   : > { %v2030_v54 = vpop.f32.mrf.mxu0 }
 0x253   : > { %v862_v55 = vpack.c.bf16 %v858_v53, %v858_v53 }
 0x254   : > { %v852_v56 = vpop.f32.mrf.mxu0 }
 0x255   : > { %2053 = vmatmul.mubr.msk.bf16.vlgmr.msra.gmra.mxu0 %vm871_vm2, %v862_v55 }
 0x256   : > { %v2031_v57 = vpop.f32.mrf.mxu0  ;;  %2064 = vmatprep.mubr.msk.bf16.mxu0 %vm2333_vm1, %v2332_v9 }
 0x305   : > { %v912_v63 = vpop.f32.mrf.mxu1 }
 0x306   : > { %v913_v1 = vadd.f32 %v912_v63, %v867_v62 }
 0x307   : > { %v2036_v2 = vpop.f32.mrf.mxu1 }
 0x308   : > { %v1054_v5 = vsel %vm1051_vm3, -3.4028235e+38, %v913_v1 }
 0x309   : > { %v915_v6 = vpop.f32.mrf.mxu1  ;;  %v1059_v7 = vsel %vm1058_vm4, %v1054_v5, -inf }
 0x30a   : > { %1060 = vmax.xlane.f32.xlu1 %v1059_v7 }
 0x30b   : > { %v2037_v11 = vpop.f32.mrf.mxu1 }
 0x30c   : > { %v2199_v11 = vld [vmem:[%s2826_s5] sm:$0xff]  }
 0x30d   : > { %v955_v12 = vpop.f32.mrf.mxu0  ;;  %v998_v13 = vpop.f32.mrf.mxu1 }
 0x30e   : > { %v956_v14 = vadd.f32 %v955_v12, %v868_v8  ;;  %v999_v15 = vadd.f32 %v998_v13, %v869_v10  ;;  %v2200_v12 = vld [vmem:[%s2826_s5 + $0x8] sm:$0xff]  }
 0x30f   : > { %v2042_v16 = vpop.f32.mrf.mxu0  ;;  %v2048_v17 = vpop.f32.mrf.mxu1 }
 0x310   : > { %v1056_v19 = vsel %vm1051_vm3, -3.4028235e+38, %v999_v15  ;;  %v1055_v20 = vsel %vm1051_vm3, -3.4028235e+38, %v956_v14  ;;  %v2201_v14 = vld [vmem:[%s2826_s5 + $0x10] sm:$0xff]  }
 0x311   : > { %v958_v21 = vpop.f32.mrf.mxu0  ;;  %v1001_v22 = vpop.f32.mrf.mxu1  ;;  %v1065_v23 = vsel %vm1058_vm4, %v1056_v19, -inf  ;;  %v1062_v24 = vsel %vm1058_vm4, %v1055_v20, -inf }
 0x312   : > { %1066 = vmax.xlane.f32.xlu0 %v1065_v23  ;;  %1063 = vmax.xlane.f32.xlu1 %v1062_v24  ;;  %v2202_v22 = vld [vmem:[%s2826_s5 + $0x18] sm:$0xff]  }
 0x313   : > { %v2043_v26 = vpop.f32.mrf.mxu0  ;;  %v2049_v27 = vpop.f32.mrf.mxu1 }
 0x315   : > { %v1041_v28 = vpop.f32.mrf.mxu0 }
 0x316   : > { %v1042_v29 = vadd.f32 %v1041_v28, %v870_v25 }
 0x317   : > { %v2054_v31 = vpop.f32.mrf.mxu0 }
 0x318   : > { %v1057_v32 = vsel %vm1051_vm3, -3.4028235e+38, %v1042_v29 }
 0x319   : > { %v1044_v33 = vpop.f32.mrf.mxu0  ;;  %v1068_v34 = vsel %vm1058_vm4, %v1057_v32, -inf }
 0x31a   : > { %1069 = vmax.xlane.f32.xlu1 %v1068_v34 }
 0x31b   : > { %v2055_v35 = vpop.f32.mrf.mxu0 }
 0x393   : > { %v1061_v36 = vpop.xlane.xlu1 %1060 }
 0x394   : > { %v1071_v37 = vsub.f32 %v1054_v5, %v1061_v36 }
 0x396   : > { %v1075_v38 = vmul.f32 1.442695, %v1071_v37 }
 0x398   : > { %2217 = vpow2.f32 %v1075_v38 }
 0x39b   : > { %v1067_v39 = vpop.xlane.xlu0 %1066  ;;  %v1064_v40 = vpop.xlane.xlu1 %1063 }
 0x39c   : > { %v1073_v41 = vsub.f32 %v1056_v19, %v1067_v39  ;;  %v1072_v42 = vsub.f32 %v1055_v20, %v1064_v40 }
 0x39e   : > { %v1079_v43 = vmul.f32 1.442695, %v1073_v41  ;;  %v1077_v44 = vmul.f32 1.442695, %v1072_v42 }
 0x3a0   : > { %2219 = vpow2.f32 %v1079_v43 }
 0x3a1   : > { %2221 = vpow2.f32 %v1077_v44 }
 0x3a3   : > { %v1070_v45 = vpop.xlane.xlu1 %1069 }
 0x3a4   : > { %v1074_v46 = vsub.f32 %v1057_v32, %v1070_v45 }
 0x3a5   : > { %v2218_v47 = vpop.eup %2217 }
 0x3a6   : > { %v1081_v48 = vmul.f32 1.442695, %v1074_v46  ;;  %v1083_v49 = vsel %vm1058_vm4, %v2218_v47, 0.0 }
 0x3a7   : > { %1084 = vadd.xlane.f32.xlu0 %v1083_v49 }
 0x3a8   : > { %2223 = vpow2.f32 %v1081_v48 }
 0x3ad   : > { %v2220_v50 = vpop.eup %2219 }
 0x3ae   : > { %v2222_v51 = vpop.eup %2221  ;;  %v1089_v52 = vsel %vm1058_vm4, %v2220_v50, 0.0 }
 0x3af   : > { %1090 = vadd.xlane.f32.xlu0 %v1089_v52  ;;  %v1086_v53 = vsel %vm1058_vm4, %v2222_v51, 0.0 }
 0x3b0   : > { %1087 = vadd.xlane.f32.xlu1 %v1086_v53 }
 0x3b5   : > { %v2224_v54 = vpop.eup %2223 }
 0x3b6   : > { %v1092_v55 = vsel %vm1058_vm4, %v2224_v54, 0.0 }
 0x3b7   : > { %1093 = vadd.xlane.f32.xlu1 %v1092_v55  ;;  %v1914_v55 = vld [vmem:[%s2827_s6] ss:$0 sm:$0xff] }
 0x3c5   : > { %1108 = vrot.lane.b32.xlu0 %v2602_v30, %s2334_s26  ;;  %s1935_s26 = sshll.u32 %s2442_s25, 7  ;;  %s1790_s25 = scalar_lea.sflag [#allocation4], %s2519_s19 }
 0x3c6   : > { %s2777_s23 = scalar_lea.hbm %s2872_s15, %s1935_s26 }
 0x430   : > { %v1085_v56 = vpop.xlane.xlu0 %1084 }
 0x431   : > { %2225 = vrcp.f32 %v1085_v56 }
 0x438   : > { %v1091_v57 = vpop.xlane.xlu0 %1090 }
 0x439   : > { %2227 = vrcp.f32 %v1091_v57  ;;  %v1088_v58 = vpop.xlane.xlu1 %1087 }
 0x43a   : > { %2229 = vrcp.f32 %v1088_v58 }
 0x43c   : > { %v1109_v59 = vpop.permute.xlu0 %1108 }
 0x43d   : > { %v1115_v60 = vsel %vm1113_vm5, %v1109_v59, 0 }
 0x43e   : > { %v2226_v61 = vpop.eup %2225  ;;  %2057 = vmatpush3.bf16.msra.mxu1 %v1115_v60  ;;  %2063 = vmatpush3.bf16.msra.mxu0 %v1115_v60 }
 0x43f   : > { %2068 = vmatprep.subr.bf16.mxu1 %v2332_v9  ;;  %v1099_v62 = vmul.f32 %v2226_v61, %v2218_v47  ;;  %2074 = vmatprep.subr.bf16.mxu0 %v2332_v9 }
 0x440   : > { %v1094_v63 = vpop.xlane.xlu1 %1093 }
 0x441   : > { %2231 = vrcp.f32 %v1094_v63  ;;  %v1103_v30 = vpack.c.bf16 %v1099_v62, %v1099_v62 }
 0x443   : > { %2059 = vmatmul.mubr.msk.bf16.vlgmr.msra.gmra.mxu1 %vm1058_vm4, %v1103_v30 }
 0x444   : > { %2069 = vmatpush3.bf16.msra.mxu1 %v1115_v60  ;;  %2070 = vmatprep.mubr.msk.bf16.mxu1 %vm2333_vm1, %v2332_v9 }
 0x445   : > { %2080 = vmatprep.subr.bf16.mxu1 %v2332_v9 }
 0x446   : > { %v2228_v1 = vpop.eup %2227 }
 0x447   : > { %v2230_v2 = vpop.eup %2229  ;;  %v1101_v3 = vmul.f32 %v2228_v1, %v2220_v50 }
 0x448   : > { %v1100_v4 = vmul.f32 %v2230_v2, %v2222_v51 }
 0x449   : > { %v1105_v5 = vpack.c.bf16 %v1101_v3, %v1101_v3 }
 0x44a   : > { %v1104_v6 = vpack.c.bf16 %v1100_v4, %v1100_v4  ;;  %v2203_v4 = vld [vmem:[%s2833_s12 + $0x8] sm:$0xff]  }
 0x44b   : > { %2071 = vmatmul.mubr.msk.bf16.vlgmr.msra.gmra.mxu1 %vm1058_vm4, %v1105_v5  ;;  %v2205_v5 = vld [vmem:[%s2833_s12] sm:$0xff]  }
 0x44c   : > { %2065 = vmatmul.mubr.msk.bf16.vlgmr.msra.gmra.mxu0 %vm1058_vm4, %v1104_v6  ;;  %2082 = vmatprep.mubr.msk.bf16.mxu1 %vm2333_vm1, %v2332_v9  ;;  %v2206_v6 = vld [vmem:[%s2831_s10] sm:$0xff]  }
 0x44d   : > { %2075 = vmatpush3.bf16.msra.mxu0 %v1115_v60  ;;  %2076 = vmatprep.mubr.msk.bf16.mxu0 %vm2333_vm1, %v2332_v9 }
 0x44e   : > { %v2232_v7 = vpop.eup %2231  ;;  %2086 = vmatprep.subr.bf16.mxu0 %v2332_v9  ;;  %2081 = vmatpush3.bf16.msra.mxu1 %v2199_v11 }
 0x44f   : > { %v1102_v8 = vmul.f32 %v2232_v7, %v2224_v54  ;;  %2092 = vmatprep.subr.bf16.mxu1 %v2332_v9 }
 0x451   : > { %v1106_v10 = vpack.c.bf16 %v1102_v8, %v1102_v8 }
 0x454   : > { %2077 = vmatmul.mubr.msk.bf16.vlgmr.msra.gmra.mxu0 %vm1058_vm4, %v1106_v10 }
 0x455   : > { %2088 = vmatprep.mubr.msk.bf16.mxu0 %vm2333_vm1, %v2332_v9  ;;  %2087 = vmatpush3.bf16.msra.mxu0 %v2200_v12  ;;  %v1915_v12 = vld [vmem:[%s2829_s8] ss:$0 sm:$0xff] }
 0x456   : > { %2098 = vmatprep.subr.bf16.mxu0 %v2332_v9 }
 0x503   : > { %v1151_v13 = vpop.f32.mrf.mxu1 }
 0x504   : > { %v1286_v15 = vpack.c.bf16 %v1151_v13, %v1151_v13 }
 0x505   : > { %v2060_v16 = vpop.f32.mrf.mxu1 }
 0x506   : > { %2083 = vmatmul.mubr.msk.bf16.vlgmr.msra.gmra.mxu1 %vm871_vm2, %v1286_v15 }
 0x507   : > { %v1154_v17 = vpop.f32.mrf.mxu1  ;;  %2093 = vmatpush3.bf16.msra.mxu1 %v2201_v14  ;;  %2094 = vmatprep.mubr.msk.bf16.mxu1 %vm2333_vm1, %v2332_v9  ;;  %v1916_v14 = vld [vmem:[%s2830_s9] ss:$0 sm:$0xff] }
 0x508   : > { %2104 = vmatprep.subr.bf16.mxu1 %v2332_v9  ;;  %v2207_v17 = vld [vmem:[%s2835_s14 + $0x38] sm:$0xff]  }
 0x509   : > { %v2061_v18 = vpop.f32.mrf.mxu1 }
 0x50b   : > { %v1237_v19 = vpop.f32.mrf.mxu1 }
 0x50c   : > { %v1194_v20 = vpop.f32.mrf.mxu0  ;;  %v1288_v21 = vpack.c.bf16 %v1237_v19, %v1237_v19  ;;  %v2208_v19 = vld [vmem:[%s2835_s14 + $0x30] sm:$0xff]  }
 0x50d   : > { %v1287_v23 = vpack.c.bf16 %v1194_v20, %v1194_v20  ;;  %v2072_v24 = vpop.f32.mrf.mxu1  ;;  %v2209_v20 = vld [vmem:[%s2835_s14 + $0x28] sm:$0xff]  }
 0x50e   : > { %v2066_v25 = vpop.f32.mrf.mxu0  ;;  %2095 = vmatmul.mubr.msk.bf16.vlgmr.msra.gmra.mxu1 %vm871_vm2, %v1288_v21  ;;  %v2210_v21 = vld [vmem:[%s2835_s14 + $0x20] sm:$0xff]   ;;  %v2213_v24 = vld [vmem:[%s2835_s14 + $0x8] sm:$0xff]  }
 0x50f   : > { %2089 = vmatmul.mubr.msk.bf16.vlgmr.msra.gmra.mxu0 %vm871_vm2, %v1287_v23  ;;  %v1240_v26 = vpop.f32.mrf.mxu1  ;;  %2108 = vmatprep.mubr.msk.bf16.mxu1 %vm2333_vm1, %v2332_v9  ;;  %v2212_v23 = vld [vmem:[%s2835_s14 + $0x10] sm:$0xff]   ;;  %v2214_v25 = vld [vmem:[%s2835_s14] sm:$0xff]  }
 0x510   : > { %2099 = vmatpush3.bf16.msra.mxu0 %v2202_v22  ;;  %v1197_v27 = vpop.f32.mrf.mxu0  ;;  %2100 = vmatprep.mubr.msk.bf16.mxu0 %vm2333_vm1, %v2332_v9  ;;  %v2211_v22 = vld [vmem:[%s2835_s14 + $0x18] sm:$0xff]   ;;  %v1921_v26 = vld [vmem:[%s2834_s13] ss:$0 sm:$0xff] }
 0x511   : > { %v2073_v28 = vpop.f32.mrf.mxu1  ;;  %2112 = vmatprep.subr.bf16.mxu0 %v2332_v9 }
 0x512   : > { %v2067_v29 = vpop.f32.mrf.mxu0 }
 0x514   : > { %v1280_v31 = vpop.f32.mrf.mxu0 }
 0x515   : > { %v1289_v32 = vpack.c.bf16 %v1280_v31, %v1280_v31 }
 0x516   : > { %v2078_v33 = vpop.f32.mrf.mxu0 }
 0x517   : > { %2101 = vmatmul.mubr.msk.bf16.vlgmr.msra.gmra.mxu0 %vm871_vm2, %v1289_v32 }
 0x518   : > { %v1283_v34 = vpop.f32.mrf.mxu0  ;;  %2116 = vmatprep.mubr.msk.bf16.mxu0 %vm2333_vm1, %v2332_v9  ;;  %2113 = vmatpush3.bf16.msra.mxu0 %v2203_v4 }
 0x519   : > { %2114 = vmatprep.subr.bf16.mxu0 %v2332_v9 }
 0x51a   : > { %v2079_v35 = vpop.f32.mrf.mxu0 }
 0x51c   : > { %2115 = vmatpush3.bf16.msra.mxu0 %v2205_v5 }
 0x5c6   : > { %v1341_v36 = vpop.f32.mrf.mxu1 }
 0x5c7   : > { %v1494_v45 = vsel %vm541_vm0, %v1341_v36, 0.0 }
 0x5c8   : > { %v2084_v37 = vpop.f32.mrf.mxu1 }
 0x5ca   : > { %v1344_v38 = vpop.f32.mrf.mxu1 }
 0x5cb   : > { %v1917_v38 = vld [vmem:[%s2869_s17] ss:$0 sm:$0xff]  ;;  %s2335_s17 = smov [#allocation5]  }
 0x5cc   : > { %v2085_v39 = vpop.f32.mrf.mxu1  ;;  %s2269_s0 = sshll.u32 %s2335_s17, 4  ;;  %s2270_s0 = int_to_ptr.vmem [resolvable:$false] %s2269_s0 }
 0x5cd   : > { %s2271_s28 = scalar_lea.vmem %s2270_s0, 256  ;;  %p2272_p3 = scmp.lt.s32.totalorder %s2779_s30, %s2270_s0 }
 0x5ce   : > { %v1439_v40 = vpop.f32.mrf.mxu1  ;;  %p2273_p5 = scmp.lt.s32.totalorder %s2271_s28, %s2265_s27 }
 0x5cf   : > { %v1390_v41 = vpop.f32.mrf.mxu0  ;;  %v1497_v51 = vsel %vm541_vm0, %v1439_v40, 0.0 }
 0x5d0   : > { %v1495_v42 = vsel %vm541_vm0, %v1390_v41, 0.0  ;;  %v2096_v43 = vpop.f32.mrf.mxu1  ;;  %p2274_p8 = por %p2273_p5, %p2272_p3 }
 0x5d1   : > { %v2090_v44 = vpop.f32.mrf.mxu0  ;;  %v1496_v47 = vadd.f32 %v1495_v42, %v1494_v45  ;;  %v1925_v45 = vld [vmem:[%s2870_s20] ss:$0 sm:$0xff] }
 0x5d2   : > { %v1442_v46 = vpop.f32.mrf.mxu1  ;;  %p2275_p10 = pnand %p2274_p8, %p2268_p1 }
 0x5d3   : > { %v1393_v48 = vpop.f32.mrf.mxu0  ;;  %v1498_v52 = vadd.f32 %v1497_v51, %v1496_v47 }
 0x5d4   : > { %v2097_v49 = vpop.f32.mrf.mxu1 }
 0x5d5   : > { %v2091_v50 = vpop.f32.mrf.mxu0 }
 0x5d7   : > { %v1488_v53 = vpop.f32.mrf.mxu0 }
 0x5d8   : > { %v1499_v54 = vsel %vm541_vm0, %v1488_v53, 0.0 }
 0x5d9   : > { %v1500_v56 = vadd.f32 %v1499_v54, %v1498_v52  ;;  %v2102_v57 = vpop.f32.mrf.mxu0 }
 0x5db   : > { %v1508_v58 = vadd.f32 %v1914_v55, %v1500_v56  ;;  %v1491_v59 = vpop.f32.mrf.mxu0 }
 0x5dd   : > { %v2103_v60 = vpop.f32.mrf.mxu0  ;;  %v2699_v61 = vadd.f32 %v1508_v58, %v2529_v0  ;;  %v2204_v0 = vld [vmem:[%s2831_s10 + $0x8] sm:$0xff]  }
 0x5de   : > { %2105 = vmatpush3.bf16.msra.mxu1 %v2204_v0 }
 0x5df   : > { %v1512_v62 = vsel %vm541_vm0, %v2699_v61, 0.0  ;;  %2106 = vmatprep.subr.bf16.mxu1 %v2332_v9 }
 0x5e0   : > { %1513 = vadd.xlane.f32.xlu1 %v1512_v62 }
 0x5e2   : > { %2107 = vmatpush3.bf16.msra.mxu1 %v2206_v6 }
 0x5e3   : > { %2120 = vmatprep.subr.bf16.mxu1 %v2332_v9 }
 0x669   : > { %v1514_v63 = vpop.xlane.xlu1 %1513 }
 0x66a   : > { %v1515_v30 = vmul.f32 0.03125, %v1514_v63 }
 0x66c   : > { %v1516_v1 = vsub.f32 %v2699_v61, %v1515_v30 }
 0x66e   : > { %v1517_v2 = vmul.f32 %v1516_v1, %v1516_v1 }
 0x670   : > { %v1518_v3 = vsel %vm541_vm0, %v1517_v2, 0.0 }
 0x671   : > { %1519 = vadd.xlane.f32.xlu1 %v1518_v3 }
 0x6fa   : > { %v1520_v7 = vpop.xlane.xlu1 %1519 }
 0x6fb   : > { %v1521_v8 = vmul.f32 0.03125, %v1520_v7 }
 0x6fd   : > { %v1522_v10 = vadd.f32 1e-05, %v1521_v8 }
 0x6ff   : > { %2233 = vrsqrt.f32 %v1522_v10 }
 0x70c   : > { %v2234_v11 = vpop.eup %2233 }
 0x70d   : > { %v1524_v13 = vmul.f32 %v2234_v11, %v1516_v1 }
 0x70f   : > { %v1531_v15 = vmul.f32 %v1915_v12, %v1524_v13 }
 0x711   : > { %v1538_v16 = vadd.f32 %v1916_v14, %v1531_v15 }
 0x713   : > { %v1539_v18 = vpack.c.bf16 %v1538_v16, %v1538_v16 }
 0x715   : > { %2109 = vmatmul.mubr.msk.bf16.vlgmr.msra.gmra.mxu1 %vm541_vm0, %v1539_v18  ;;  %2117 = vmatmul.mubr.msk.bf16.vlgmr.msra.gmra.mxu0 %vm541_vm0, %v1539_v18 }
 0x716   : > { %2121 = vmatpush3.bf16.msra.mxu1 %v2207_v17  ;;  %2136 = vmatprep.mubr.msk.bf16.mxu1 %vm2333_vm1, %v2332_v9 }
 0x717   : > { %2122 = vmatprep.subr.bf16.mxu1 %v2332_v9 }
 0x71a   : > { %2123 = vmatpush3.bf16.msra.mxu1 %v2208_v19 }
 0x71b   : > { %2124 = vmatprep.subr.bf16.mxu1 %v2332_v9 }
 0x71e   : > { %2125 = vmatpush3.bf16.msra.mxu1 %v2209_v20 }
 0x71f   : > { %2126 = vmatprep.subr.bf16.mxu1 %v2332_v9 }
 0x722   : > { %2127 = vmatpush3.bf16.msra.mxu1 %v2210_v21 }
 0x723   : > { %2128 = vmatprep.subr.bf16.mxu1 %v2332_v9 }
 0x726   : > { %2129 = vmatpush3.bf16.msra.mxu1 %v2211_v22 }
 0x727   : > { %2130 = vmatprep.subr.bf16.mxu1 %v2332_v9 }
 0x72a   : > { %2131 = vmatpush3.bf16.msra.mxu1 %v2212_v23 }
 0x72b   : > { %2132 = vmatprep.subr.bf16.mxu1 %v2332_v9 }
 0x72e   : > { %2133 = vmatpush3.bf16.msra.mxu1 %v2213_v24 }
 0x72f   : > { %2134 = vmatprep.subr.bf16.mxu1 %v2332_v9 }
 0x732   : > { %2135 = vmatpush3.bf16.msra.mxu1 %v2214_v25 }
 0x7d5   : > { %v1600_v27 = vpop.f32.mrf.mxu1  ;;  %v1663_v28 = vpop.f32.mrf.mxu0 }
 0x7d6   : > { %v1664_v29 = vadd.f32 %v1921_v26, %v1663_v28  ;;  %v1601_v41 = vadd.f32 %v1917_v38, %v1600_v27 }
 0x7d7   : > { %v2110_v31 = vpop.f32.mrf.mxu1  ;;  %v2118_v32 = vpop.f32.mrf.mxu0 }
 0x7d8   : > { %v1670_v33 = vmul.f32 0.70710677, %v1664_v29  ;;  %v1669_v39 = vmul.f32 0.5, %v1664_v29 }
 0x7d9   : > { %v1603_v34 = vpop.f32.mrf.mxu1  ;;  %v1666_v35 = vpop.f32.mrf.mxu0 }
 0x7da   : > { %2235 = verf.f32 %v1670_v33 }
 0x7db   : > { %v2111_v9 = vpop.f32.mrf.mxu1  ;;  %v2119_v36 = vpop.f32.mrf.mxu0 }
 0x7e7   : > { %v2236_v37 = vpop.eup %2235 }
 0x7e8   : > { %v1672_v40 = vadd.f32 1.0, %v2236_v37 }
 0x7ea   : > { %v1673_v42 = vmul.f32 %v1672_v40, %v1669_v39 }
 0x7ec   : > { %v1674_v43 = vmul.f32 %v1673_v42, %v1601_v41 }
 0x7ee   : > { %v1675_v44 = vpack.c.bf16 %v1674_v43, %v1674_v43 }
 0x7f0   : > { %2137 = vmatmul.mubr.bf16.vlgmr.msra.gmra.mxu1 %v1675_v44 }
 0x8b0   : > { %v1781_v46 = vpop.f32.mrf.mxu1 }
 0x8b1   : > { %v1782_v47 = vadd.f32 %v1925_v45, %v1781_v46 }
 0x8b2   : > { %v2138_v48 = vpop.f32.mrf.mxu1 }
 0x8b3   : > { %v1787_v49 = vadd.f32 %v1782_v47, %v2699_v61 }
 0x8b4   : > { %v1784_v50 = vpop.f32.mrf.mxu1 }
 0x8b5   : > { %1788 = vst.msk [vmem:[%s536_s21] sm:$0xff] %vm541_vm0, %v1787_v49 }
 0x8b6   : > { %v2139_v51 = vpop.f32.mrf.mxu1 }
 0x8b7   : > { %2278 = shalt.err (!%p2275_p10)
}
 0x8b8   : > { %s2279_s20 = scalar_lea.hbm %s2777_s23, 128  ;;  %s2283_s21 = scalar_lea.hbm %s2872_s15, 256 }
 0x8b9   : > { %p2280_p2 = scmp.ne.s32.totalorder %s2777_s23, %s2279_s20  ;;  %p2284_p7 = scmp.lt.s32.totalorder %s2777_s23, %s2872_s15 }
 0x8ba   : > { %p2285_p0 = scmp.lt.s32.totalorder %s2283_s21, %s2279_s20 }
 0x8bb   : > { %p2281_p4 = pnand %p2280_p2, %p2873_p12 }
 0x8bc   : > { %p2286_p6 = por %p2285_p0, %p2284_p7 }
 0x8bd   : > { %p2282_p9 = pneg %p2281_p4 }
 0x8bf   : > { %p2287_p11 = pnand %p2286_p6, %p2282_p9 }
 0x8c1   : > { %2290 = shalt.err (!%p2287_p11)
}
 0x8c2   : > { %2142 = dma.vmem_to_hbm [thread:$0]  (%p2873_p12), %s2779_s30, 128, %s2777_s23, %s1790_s25  }
 0x8c3 PF: > { %s2874_s27 = sld [smem:[#allocation8_spill]]  ;;  %p2877_p1 = scmp.ge.s32.totalorder %s2329_s24, 2 }
 0x8c4   : > { %s2875_s17 = sld [smem:[#allocation13_spill]] }
 0x8c9   : > { %s1815_s0 = sand.u32 1, %s2874_s27  }
 0x8ca   : > { %p2876_p13 = scmp.ne.s32.totalorder %s2875_s17, 0  ;;  %s1816_s28 = scalar_lea.sflag [#allocation4], %s1815_s0 }
 0x8cc   : > { %p2149_p3 = pnand %p2877_p1, %p2876_p13 }
 0x8ce   : > { %p2150_p5 = pneg %p2149_p3 }
 0x8d0   : > { %2312 = dma.done.wait (%p2150_p5), %s1816_s28, 128  }
 0x8d1   : > { %2314 = vsyncadd (%p2150_p5), %s1816_s28, 4294967168  ;;  %s2878_s24 = sld [smem:[#allocation10_spill]]  ;;  %s2881_s21 = smov %s2321_s22 }
 0x8d2   : > { %s2879_s20 = sld [smem:[#allocation9_spill]] }
 0x8d3   : > { %s2880_s23 = sld [smem:[#allocation11_spill]] }
 0x8d7   : > { %p29_p8 = scmp.ge.s32.totalorder %s2878_s24, 4  }
 0x8d8   : > { %s2882_s22 = smov %s2879_s20 }
 0x8d9   :  { %31 = sbr.rel (!%p29_p8) target bundleno = 10 (0xa), region = 129 }
 0x8de   :  { %1821 = vsyncpa [#allocation3], 1 }
 0x8df   :  { %1823 = vsyncpa [#allocation3 + $0x1], 1 }
 0x8e0   :  { %1824 = vsyncpa [#allocation4], 1 }
 0x8e1   :  { %1826 = vsyncpa [#allocation4 + $0x1], 1 }

</bundles_post_ra>
